<compile_context>
chip_gen: v7x
topology: tpu7x:2x2x1
jax: 0.10.0
libtpu: 0.0.40
codegen_flags: <defaults>
</compile_context>

<pallas_src>
import functools
import math

import jax
import jax.numpy as jnp
from jax.experimental import pallas as pl
from jax.experimental.pallas import tpu as pltpu

LANE = 128  # TPU lane width: feature dims are zero-padded to a multiple of this.


def _round_up(n, m):
    return ((n + m - 1) // m) * m


def _full_spec(shape):
    # Whole array as a single block (valid: block dims equal full array dims).
    return pl.BlockSpec(shape, lambda i, _n=len(shape): (0,) * _n)


def _vmem_capacity_bytes():
    try:
        return int(pltpu.get_tpu_info().vmem_capacity_bytes)
    except Exception:  # pragma: no cover - conservative fallback
        return 128 * 1024 * 1024


def _conv_vmem_bytes(node_num, tm, c_in, c_out_pad):
    """Estimated VMEM need for one conv pallas_call (double-buffered pipeline + scratch)."""
    bf, f32 = 2, 4
    c3 = 3 * c_out_pad
    x_blk = node_num * c_in * bf              # resident per graph, pipelined across batch
    a_blk = tm * node_num * bf                # per row tile (x2: up + down)
    out_blk = tm * c3 * bf
    w_blk = c_in * c3 * bf
    b_blk = c3 * f32
    scratch = node_num * 2 * c_out_pad * bf + node_num * c_out_pad * f32
    temps = node_num * c3 * f32 + 4 * tm * c_out_pad * f32   # in-kernel proj + epilogue f32
    return 2 * (x_blk + 2 * a_blk + out_blk + w_blk + b_blk) + scratch + temps


def _plan_conv_tiling(node_num, c_in, c_out_pad):
    """Pick a row tile TM (multiple of 8 dividing node_num) and vmem_limit_bytes that fit the
    device's VMEM capacity (64 MiB on v7x, 128 MiB on v5e/v6e)."""
    budget = max(min(_vmem_capacity_bytes() - (4 << 20), 100 << 20), 32 << 20)
    cands = sorted({node_num} | {t for t in range(8, node_num, 8) if node_num % t == 0},
                   reverse=True)
    tm = cands[-1]
    for t in cands:
        if _conv_vmem_bytes(node_num, t, c_in, c_out_pad) <= budget:
            tm = t
            break
    need = _conv_vmem_bytes(node_num, tm, c_in, c_out_pad)
    limit = int(max(32 << 20, min(int(need * 1.25) + (2 << 20), budget)))
    return tm, limit


# ---------------------------------------------------------------------------
# Kernel 1: one WeBGNNConv layer (+ folded BN bias + LeakyReLU(0.1) epilogue), row-tiled.
#   under pl.when(row_tile == 0):   proj = x @ [W_up | W_down | W_bias] (+ bias), f32 acc,
#                                   stored to persistent VMEM scratch (up/down bf16, bias f32)
#   per row tile:                   x_up   = A_up[rows]   @ proj_up
#                                   x_down = A_down[rows] @ proj_down
#                                   out    = leaky_relu(l2_normalize([x_up|x_down|bias]), 0.1)
# ---------------------------------------------------------------------------
def _webgnn_conv_kernel(x_ref, a_up_ref, a_down_ref, w_ref, b_ref, o_ref,
                        proj_ud_ref, proj_bias_ref, *, c_out, tm):
    rt = pl.program_id(1)

    @pl.when(rt == 0)
    def _():
        # Full-graph projection once per graph; scratch persists across row tiles.
        proj = jnp.dot(x_ref[0], w_ref[...],
                       preferred_element_type=jnp.float32) + b_ref[...]        # (N, 3*c_out) f32
        proj_ud_ref[...] = proj[:, : 2 * c_out].astype(jnp.bfloat16)           # MXU operands
        proj_bias_ref[...] = proj[:, 2 * c_out:]                               # bias slab stays f32

    x_up = jnp.dot(a_up_ref[0], proj_ud_ref[:, :c_out],
                   preferred_element_type=jnp.float32)                          # (tm, c_out)
    x_down = jnp.dot(a_down_ref[0], proj_ud_ref[:, c_out:],
                     preferred_element_type=jnp.float32)
    if tm % 8 == 0:
        row0 = pl.multiple_of(rt * tm, 8)
    else:
        row0 = rt * tm
    x_bias = proj_bias_ref[pl.ds(row0, tm), :]

    # F.normalize(p=2, dim=-1, eps=1e-12) over the (virtual) concatenation.
    # Padded feature columns are exactly zero (zero weight columns), so the norm is exact.
    ssq = (jnp.sum(x_up * x_up, axis=-1, keepdims=True)
           + jnp.sum(x_down * x_down, axis=-1, keepdims=True)
           + jnp.sum(x_bias * x_bias, axis=-1, keepdims=True))
    inv_norm = jax.lax.rsqrt(jnp.maximum(ssq, 1e-24))   # == 1 / max(||v||, 1e-12)

    def _epilogue(v):  # f32 normalize + LeakyReLU(0.1) as mul+max, bf16 store
        v = v * inv_norm
        return jnp.maximum(v, 0.1 * v).astype(o_ref.dtype)

    # Lane-aligned (128-multiple) slice stores instead of an in-kernel concatenate.
    o_ref[0, :, 0:c_out] = _epilogue(x_up)
    o_ref[0, :, c_out:2 * c_out] = _epilogue(x_down)
    o_ref[0, :, 2 * c_out:3 * c_out] = _epilogue(x_bias)


def webgnn_conv_pallas(x, a_up, a_down, w_fused, bias, c_out_pad):
    # x:       (batch, node_num, c_in)        bf16 (c_in 128-padded)
    # a_up/dn: (batch, node_num, node_num)    bf16 (block-diagonal adjacency blocks)
    # w_fused: (c_in, 3*c_out_pad)            bf16
    # bias:    (1, 3*c_out_pad)               f32  (folded BatchNorm bias; zeros otherwise)
    batch, node_num, c_in = x.shape
    out_c = 3 * c_out_pad
    tm, vmem_limit = _plan_conv_tiling(node_num, c_in, c_out_pad)
    n_rt = node_num // tm
    kernel = functools.partial(_webgnn_conv_kernel, c_out=c_out_pad, tm=tm)
    return pl.pallas_call(
        kernel,
        out_shape=jax.ShapeDtypeStruct((batch, node_num, out_c), jnp.bfloat16),
        grid=(batch, n_rt),
        in_specs=[
            pl.BlockSpec((1, node_num, c_in), lambda b, r: (b, 0, 0)),     # resident per graph
            pl.BlockSpec((1, tm, node_num), lambda b, r: (b, r, 0)),       # row tile of A_up
            pl.BlockSpec((1, tm, node_num), lambda b, r: (b, r, 0)),       # row tile of A_down
            pl.BlockSpec((c_in, out_c), lambda b, r: (0, 0)),              # weights resident
            pl.BlockSpec((1, out_c), lambda b, r: (0, 0)),                 # bias resident
        ],
        out_specs=pl.BlockSpec((1, tm, out_c), lambda b, r: (b, r, 0)),
        scratch_shapes=[
            pltpu.VMEM((node_num, 2 * c_out_pad), jnp.bfloat16),           # proj up|down (MXU)
            pltpu.VMEM((node_num, c_out_pad), jnp.float32),                # proj bias (f32)
        ],
        compiler_params=pltpu.CompilerParams(
            dimension_semantics=("parallel", "arbitrary"),                 # batch megacore-sharded
            vmem_limit_bytes=vmem_limit,                                   # derived per block set
        ),
    )(x, a_up, a_down, w_fused, bias)


# ---------------------------------------------------------------------------
# Kernel 2: decoder bilinear score, no transpose, shared-P1 matmul:
#   ypred[i] = a_i @ P1 @ P2 @ P1^T @ b_i  ==  sum((a_i@P1@P2) * (b_i@P1))
# a and b are stacked to a single (2B, 3*e_pad) @ P1 push; output block is lane-dense (B, 128).
# ---------------------------------------------------------------------------
def _decoder_kernel(eab_ref, p1_ref, p2_ref, o_ref, *, n_pairs):
    t = jnp.dot(eab_ref[...], p1_ref[...], preferred_element_type=jnp.float32)   # (2B, D)
    t_a = t[:n_pairs]
    t_b = t[n_pairs:]
    u = jnp.dot(t_a.astype(jnp.bfloat16), p2_ref[...],
                preferred_element_type=jnp.float32)                               # (B, D)
    score = jnp.sum(u * t_b, axis=-1, keepdims=True)                              # (B, 1)
    o_ref[...] = jnp.broadcast_to(score, o_ref.shape)                             # lane-dense store


def decoder_bilinear_pallas(emb_a, emb_b, p1, p2):
    n_pairs = emb_a.shape[0]
    emb_ab = jnp.concatenate([emb_a, emb_b], axis=0)                              # (2B, 3*e_pad)
    kernel = functools.partial(_decoder_kernel, n_pairs=n_pairs)
    out = pl.pallas_call(
        kernel,
        out_shape=jax.ShapeDtypeStruct((n_pairs, LANE), jnp.float32),
        grid=(1,),
        in_specs=[_full_spec(emb_ab.shape), _full_spec(p1.shape), _full_spec(p2.shape)],
        out_specs=_full_spec((n_pairs, LANE)),
        compiler_params=pltpu.CompilerParams(dimension_semantics=("arbitrary",)),
    )(emb_ab, p1, p2)
    return out[:, :1]


# ---------------------------------------------------------------------------
# Plain-JAX glue: parameter init, block-diagonal adjacency assembly, BN fold, gather.
# ---------------------------------------------------------------------------
def _init_conv_params(key, fan_in, c_in_pad, c_out, c_out_pad, num_gene_edge,
                      n_real_in_rows=None):
    kw, ku, kd = jax.random.split(key, 3)
    bound = 1.0 / math.sqrt(fan_in)            # torch.nn.Linear default init (logical fan-in)
    w = jax.random.uniform(kw, (c_in_pad, 3 * c_out_pad), jnp.float32, -bound, bound)
    # Zero the padded output columns of each of the 3 fused slabs so padded features stay
    # exactly 0 (keeps the L2 normalization identical to the unpadded model).
    col_real = (jnp.arange(3 * c_out_pad) % c_out_pad) < c_out
    w = jnp.where(col_real[None, :], w, 0.0)
    if n_real_in_rows is not None and n_real_in_rows != c_in_pad:
        row_real = jnp.arange(c_in_pad) < n_real_in_rows
        w = jnp.where(row_real[:, None], w, 0.0)
    gain = math.sqrt(2.0)                      # torch.nn.init.calculate_gain('relu')
    return dict(
        w_fused=w,                             # fused [W_up | W_down | W_bias]
        up_gene_edge_weight=jax.random.normal(ku, (num_gene_edge,), jnp.float32) * gain,
        down_gene_edge_weight=jax.random.normal(kd, (num_gene_edge,), jnp.float32) * gain,
    )


def init_decoder_params(key, input_dim, hidden_dim, embedding_dim, decoder_dim, num_gene_edge):
    in_pad = _round_up(input_dim, LANE)
    h_pad = _round_up(hidden_dim, LANE)
    e_pad = _round_up(embedding_dim, LANE)
    d_pad = _round_up(decoder_dim, LANE)
    k1, k2, k3, k4, k5 = jax.random.split(key, 5)
    p1 = jax.random.normal(k4, (3 * e_pad, d_pad), jnp.float32)
    p1 = jnp.where((jnp.arange(d_pad) < decoder_dim)[None, :], p1, 0.0)   # zero padded cols
    p2 = jax.random.normal(k5, (d_pad, d_pad), jnp.float32)
    dmask = (jnp.arange(d_pad) < decoder_dim).astype(jnp.float32)
    p2 = p2 * dmask[:, None] * dmask[None, :]
    return dict(
        conv_first=_init_conv_params(k1, input_dim, in_pad, hidden_dim, h_pad,
                                     num_gene_edge, n_real_in_rows=input_dim),
        conv_block=_init_conv_params(k2, 3 * hidden_dim, 3 * h_pad, hidden_dim, h_pad,
                                     num_gene_edge),
        conv_last=_init_conv_params(k3, 3 * hidden_dim, 3 * h_pad, embedding_dim, e_pad,
                                    num_gene_edge),
        parameter1=p1,
        parameter2=p2,
    )


def _adjacency_plan(edge_index, node_num, num_nodes):
    # MessagePassing(aggr='add'): out[dst] += (1/in_degree(dst)) * edge_weight[e] * x[src].
    # Structure / degrees / norm are identical across the three conv layers -> computed once.
    src, dst = edge_index[0], edge_index[1]
    deg = jnp.zeros((num_nodes,), jnp.float32).at[dst].add(1.0)
    # NOTE: torch's deg.pow(-1) gives inf for isolated nodes; we guard with 0 instead.
    inv_deg = jnp.where(deg > 0, 1.0 / deg, 0.0)
    return dict(b=dst // node_num, r=dst % node_num, c=src % node_num, norm=inv_deg[dst])


def _assemble_block_adjacency(plan, edge_weight, batch_size, node_num):
    # Block-diagonal batched operator assembled DIRECTLY in bf16 (no f32 intermediate pass).
    vals = (plan["norm"] * edge_weight).astype(jnp.bfloat16)
    a = jnp.zeros((batch_size, node_num, node_num), jnp.bfloat16)
    return a.at[plan["b"], plan["r"], plan["c"]].add(vals)


def webgnn_decoder_forward(params, x, edge_index, drug_index, *,
                           node_num, num_edge, num_gene_edge):
    n_total, input_dim = x.shape
    batch_size = n_total // node_num
    num_drug_edge = num_edge - num_gene_edge

    in_pad = params["conv_first"]["w_fused"].shape[0]
    h_pad = params["conv_first"]["w_fused"].shape[1] // 3
    e_pad = params["conv_last"]["w_fused"].shape[1] // 3

    # BatchNorm1d (training-mode batch stats, gamma=1 / beta=0 default init) folded into the
    # first projection: bn(x) @ W == x @ (inv_std * W) - mean @ (inv_std * W).
    mean = jnp.mean(x, axis=0)
    var = jnp.mean(jnp.square(x - mean), axis=0)          # biased var, as BN uses to normalize
    inv_std = jax.lax.rsqrt(var + 1e-5)
    if in_pad != input_dim:                               # lane-pad input_dim to 128
        pad = in_pad - input_dim
        inv_std = jnp.concatenate([inv_std, jnp.ones((pad,), jnp.float32)])
        mean = jnp.concatenate([mean, jnp.zeros((pad,), jnp.float32)])
        x = jnp.pad(x, ((0, 0), (0, pad)))
    w_first = params["conv_first"]["w_fused"] * inv_std[:, None]
    bias_first = -jnp.dot(mean[None, :], w_first)         # (1, 3*h_pad), f32

    # Adjacency structure computed once, reused by all three layers.
    plan_up = _adjacency_plan(edge_index, node_num, n_total)
    plan_down = _adjacency_plan(jnp.flipud(edge_index), node_num, n_total)

    def layer_adjacency(conv_p):
        ones_drug = jnp.ones((num_drug_edge,), jnp.float32)
        up_w = jnp.tile(jnp.concatenate([conv_p["up_gene_edge_weight"], ones_drug]), batch_size)
        down_w = jnp.tile(jnp.concatenate([conv_p["down_gene_edge_weight"], ones_drug]), batch_size)
        return (_assemble_block_adjacency(plan_up, up_w, batch_size, node_num),
                _assemble_block_adjacency(plan_down, down_w, batch_size, node_num))

    h = x.reshape(batch_size, node_num, in_pad).astype(jnp.bfloat16)

    a_up, a_down = layer_adjacency(params["conv_first"])
    h = webgnn_conv_pallas(h, a_up, a_down, w_first.astype(jnp.bfloat16), bias_first, h_pad)

    zeros_h = jnp.zeros((1, 3 * h_pad), jnp.float32)
    a_up, a_down = layer_adjacency(params["conv_block"])
    h = webgnn_conv_pallas(h, a_up, a_down,
                           params["conv_block"]["w_fused"].astype(jnp.bfloat16), zeros_h, h_pad)

    zeros_e = jnp.zeros((1, 3 * e_pad), jnp.float32)
    a_up, a_down = layer_adjacency(params["conv_last"])
    h = webgnn_conv_pallas(h, a_up, a_down,
                           params["conv_last"]["w_fused"].astype(jnp.bfloat16), zeros_e, e_pad)

    # Decoder: gather the two drug-node embeddings per sample (glue) + bilinear kernel.
    emb = h.reshape(batch_size * node_num, 3 * e_pad)
    di = drug_index.reshape(-1, 2)
    emb_a = emb[di[:, 0] - 1]                 # 1-based indices in the torch code
    emb_b = emb[di[:, 1] - 1]
    return decoder_bilinear_pallas(emb_a, emb_b,
                                   params["parameter1"].astype(jnp.bfloat16),
                                   params["parameter2"].astype(jnp.bfloat16))


if __name__ == "__main__":
    # Small synthetic config.
    node_num = 8
    batch_size = 2
    input_dim = 16
    hidden_dim = 8
    embedding_dim = 8
    decoder_dim = 8
    num_gene_edge = 8
    num_drug_edge = 4
    num_edge = num_gene_edge + num_drug_edge
    n_total = node_num * batch_size

    key = jax.random.PRNGKey(0)
    k_param, k_x = jax.random.split(key)
    params = init_decoder_params(k_param, input_dim, hidden_dim, embedding_dim,
                                 decoder_dim, num_gene_edge)

    # Node features: (batch * node_num, input_dim)
    x = jax.random.normal(k_x, (n_total, input_dim), jnp.float32)

    # Per-graph edges: gene edges first, then drug edges (matches weight concat order),
    # replicated per batch with a node offset (no cross-batch edges).
    gene_src = jnp.array([0, 1, 2, 3, 4, 5, 6, 7], jnp.int32)
    gene_dst = jnp.array([1, 2, 3, 4, 5, 6, 7, 0], jnp.int32)
    drug_src = jnp.array([0, 1, 2, 3], jnp.int32)
    drug_dst = jnp.array([4, 5, 6, 7], jnp.int32)
    src1 = jnp.concatenate([gene_src, drug_src])
    dst1 = jnp.concatenate([gene_dst, drug_dst])
    src = jnp.concatenate([src1 + b * node_num for b in range(batch_size)])
    dst = jnp.concatenate([dst1 + b * node_num for b in range(batch_size)])
    edge_index = jnp.stack([src, dst], axis=0)          # (2, num_edge * batch_size)

    # 1-based drug-node indices into the batched node array, two per sample.
    drug_index = jnp.array([5, 8, 13, 16], jnp.int32)   # reshaped to (-1, 2) in forward

    fwd = jax.jit(functools.partial(webgnn_decoder_forward,
                                    node_num=node_num, num_edge=num_edge,
                                    num_gene_edge=num_gene_edge))
    ypred = fwd(params, x, edge_index, drug_index)
    ypred = jax.block_until_ready(ypred)
    assert ypred.shape == (batch_size, 1) and ypred.dtype == jnp.float32
    assert bool(jnp.all(jnp.isfinite(ypred)))
    print("KERNEL_OK")
</pallas_src>

<mosaic_0001>
module attributes {stable_mosaic.version = 11 : i64} {
  func.func @_webgnn_conv_kernel(%arg0: i32, %arg1: i32, %arg2: memref<1x8x128xbf16, #tpu.memory_space<vmem>>, %arg3: memref<1x8x8xbf16, #tpu.memory_space<vmem>>, %arg4: memref<1x8x8xbf16, #tpu.memory_space<vmem>>, %arg5: memref<128x384xbf16, #tpu.memory_space<vmem>>, %arg6: memref<1x384xf32, #tpu.memory_space<vmem>>, %arg7: memref<1x8x384xbf16, #tpu.memory_space<vmem>>, %arg8: memref<8x256xbf16, #tpu.memory_space<vmem>>, %arg9: memref<8x128xf32, #tpu.memory_space<vmem>>) attributes {dimension_semantics = [#tpu.dimension_semantics<parallel>, #tpu.dimension_semantics<arbitrary>], iteration_bounds = array<i64: 2, 1>, scalar_prefetch = 0 : i64, scratch_operands = 2 : i64, tpu.core_type = #tpu.core_type<tc>, window_params = [{transform_indices = @transform_0, window_bounds = array<i64: 1, 8, 128>}, {transform_indices = @transform_1, window_bounds = array<i64: 1, 8, 8>}, {transform_indices = @transform_2, window_bounds = array<i64: 1, 8, 8>}, {pipeline_mode = #tpu.pipeline_mode<synchronous>, transform_indices = @transform_3, window_bounds = array<i64: 128, 384>}, {pipeline_mode = #tpu.pipeline_mode<synchronous>, transform_indices = @transform_4, window_bounds = array<i64: 1, 384>}, {transform_indices = @transform_5, window_bounds = array<i64: 1, 8, 384>}]} {
    %c0_i32 = arith.constant 0 : i32
    %0 = arith.cmpi eq, %arg1, %c0_i32 : i32
    %1 = arith.extui %0 : i1 to i32
    %c0_i32_0 = arith.constant 0 : i32
    %2 = arith.cmpi ne, %1, %c0_i32_0 : i32
    scf.if %2 {
      %c0_26 = arith.constant 0 : index
      %c0_27 = arith.constant 0 : index
      %c0_28 = arith.constant 0 : index
      %56 = vector.load %arg2[%c0_26, %c0_27, %c0_28] : memref<1x8x128xbf16, #tpu.memory_space<vmem>>, vector<1x8x128xbf16>
      %57 = vector.shape_cast %56 : vector<1x8x128xbf16> to vector<8x128xbf16>
      %c0_29 = arith.constant 0 : index
      %c0_30 = arith.constant 0 : index
      %58 = vector.load %arg5[%c0_29, %c0_30] : memref<128x384xbf16, #tpu.memory_space<vmem>>, vector<128x384xbf16>
      %cst_31 = arith.constant dense<0.000000e+00> : vector<8x384xf32>
      %59 = tpu.matmul %57, %58, %cst_31 {dimension_numbers = #tpu.dot_dimension_numbers<[1], [0], [0], [1], [0, 0, 1, 1], [], []>} : vector<8x128xbf16>, vector<128x384xbf16>, vector<8x384xf32> -> vector<8x384xf32>
      %c0_32 = arith.constant 0 : index
      %c0_33 = arith.constant 0 : index
      %60 = vector.load %arg6[%c0_32, %c0_33] : memref<1x384xf32, #tpu.memory_space<vmem>>, vector<1x384xf32>
      %61 = vector.broadcast %60 : vector<1x384xf32> to vector<8x384xf32>
      %62 = arith.addf %59, %61 : vector<8x384xf32>
      %63 = vector.extract_strided_slice %62 {offsets = [0, 0], sizes = [8, 256], strides = [1, 1]} : vector<8x384xf32> to vector<8x256xf32>
      %64 = arith.truncf %63 : vector<8x256xf32> to vector<8x256xbf16>
      %c0_34 = arith.constant 0 : index
      %c0_35 = arith.constant 0 : index
      %65 = vector.load %arg8[%c0_34, %c0_35] : memref<8x256xbf16, #tpu.memory_space<vmem>>, vector<8x256xbf16>
      tpu.vector_store %arg8[%c0_34, %c0_35], %64 {strides = array<i32>} : memref<8x256xbf16, #tpu.memory_space<vmem>>, vector<8x256xbf16>,
      %66 = vector.extract_strided_slice %62 {offsets = [0, 256], sizes = [8, 128], strides = [1, 1]} : vector<8x384xf32> to vector<8x128xf32>
      %c0_36 = arith.constant 0 : index
      %c0_37 = arith.constant 0 : index
      %67 = vector.load %arg9[%c0_36, %c0_37] : memref<8x128xf32, #tpu.memory_space<vmem>>, vector<8x128xf32>
      tpu.vector_store %arg9[%c0_36, %c0_37], %66 {strides = array<i32>} : memref<8x128xf32, #tpu.memory_space<vmem>>, vector<8x128xf32>,
    } else {
    }
    %c0 = arith.constant 0 : index
    %c0_1 = arith.constant 0 : index
    %c0_2 = arith.constant 0 : index
    %3 = vector.load %arg3[%c0, %c0_1, %c0_2] : memref<1x8x8xbf16, #tpu.memory_space<vmem>>, vector<1x8x8xbf16>
    %4 = vector.shape_cast %3 : vector<1x8x8xbf16> to vector<8x8xbf16>
    %c0_3 = arith.constant 0 : index
    %c0_4 = arith.constant 0 : index
    %5 = vector.load %arg8[%c0_3, %c0_4] : memref<8x256xbf16, #tpu.memory_space<vmem>>, vector<8x128xbf16>
    %cst = arith.constant dense<0.000000e+00> : vector<8x128xf32>
    %6 = tpu.matmul %4, %5, %cst {dimension_numbers = #tpu.dot_dimension_numbers<[1], [0], [0], [1], [0, 0, 1, 1], [], []>} : vector<8x8xbf16>, vector<8x128xbf16>, vector<8x128xf32> -> vector<8x128xf32>
    %c0_5 = arith.constant 0 : index
    %c0_6 = arith.constant 0 : index
    %c0_7 = arith.constant 0 : index
    %7 = vector.load %arg4[%c0_5, %c0_6, %c0_7] : memref<1x8x8xbf16, #tpu.memory_space<vmem>>, vector<1x8x8xbf16>
    %8 = vector.shape_cast %7 : vector<1x8x8xbf16> to vector<8x8xbf16>
    %c0_8 = arith.constant 0 : index
    %c128 = arith.constant 128 : index
    %9 = vector.load %arg8[%c0_8, %c128] : memref<8x256xbf16, #tpu.memory_space<vmem>>, vector<8x128xbf16>
    %cst_9 = arith.constant dense<0.000000e+00> : vector<8x128xf32>
    %10 = tpu.matmul %8, %9, %cst_9 {dimension_numbers = #tpu.dot_dimension_numbers<[1], [0], [0], [1], [0, 0, 1, 1], [], []>} : vector<8x8xbf16>, vector<8x128xbf16>, vector<8x128xf32> -> vector<8x128xf32>
    %c8_i32 = arith.constant 8 : i32
    %11 = arith.muli %arg1, %c8_i32 : i32
    %12 = tpu.assume_multiple %11, 8 : i32
    %13 = arith.index_cast %12 : i32 to index
    %c0_10 = arith.constant 0 : index
    %14 = vector.load %arg9[%13, %c0_10] : memref<8x128xf32, #tpu.memory_space<vmem>>, vector<8x128xf32>
    %15 = arith.mulf %6, %6 : vector<8x128xf32>
    %cst_11 = arith.constant dense<0.000000e+00> : vector<8xf32>
    %16 = vector.multi_reduction <add>, %15, %cst_11 [1] : vector<8x128xf32> to vector<8xf32>
    %17 = vector.shape_cast %16 : vector<8xf32> to vector<8x1xf32>
    %18 = arith.mulf %10, %10 : vector<8x128xf32>
    %cst_12 = arith.constant dense<0.000000e+00> : vector<8xf32>
    %19 = vector.multi_reduction <add>, %18, %cst_12 [1] : vector<8x128xf32> to vector<8xf32>
    %20 = vector.shape_cast %19 : vector<8xf32> to vector<8x1xf32>
    %21 = arith.addf %17, %20 : vector<8x1xf32>
    %22 = arith.mulf %14, %14 : vector<8x128xf32>
    %cst_13 = arith.constant dense<0.000000e+00> : vector<8xf32>
    %23 = vector.multi_reduction <add>, %22, %cst_13 [1] : vector<8x128xf32> to vector<8xf32>
    %24 = vector.shape_cast %23 : vector<8xf32> to vector<8x1xf32>
    %25 = arith.addf %21, %24 : vector<8x1xf32>
    %cst_14 = arith.constant 1.000000e-24 : f32
    %26 = vector.broadcast %cst_14 : f32 to vector<8x1xf32>
    %27 = arith.maximumf %25, %26 : vector<8x1xf32>
    %28 = math.rsqrt %27 : vector<8x1xf32>
    %29 = vector.broadcast %28 : vector<8x1xf32> to vector<8x128xf32>
    %30 = arith.mulf %6, %29 : vector<8x128xf32>
    %cst_15 = arith.constant 1.000000e-01 : f32
    %31 = vector.broadcast %cst_15 : f32 to vector<8x128xf32>
    %32 = arith.mulf %31, %30 : vector<8x128xf32>
    %33 = arith.maximumf %30, %32 : vector<8x128xf32>
    %34 = arith.truncf %33 : vector<8x128xf32> to vector<8x128xbf16>
    %c0_16 = arith.constant 0 : index
    %c0_17 = arith.constant 0 : index
    %c0_18 = arith.constant 0 : index
    %35 = vector.load %arg7[%c0_16, %c0_17, %c0_18] : memref<1x8x384xbf16, #tpu.memory_space<vmem>>, vector<1x8x128xbf16>
    %36 = vector.shape_cast %35 : vector<1x8x128xbf16> to vector<8x128xbf16>
    %37 = vector.shape_cast %34 : vector<8x128xbf16> to vector<1x8x128xbf16>
    tpu.vector_store %arg7[%c0_16, %c0_17, %c0_18], %37 {strides = array<i32>} : memref<1x8x384xbf16, #tpu.memory_space<vmem>>, vector<1x8x128xbf16>,
    %38 = vector.broadcast %28 : vector<8x1xf32> to vector<8x128xf32>
    %39 = arith.mulf %10, %38 : vector<8x128xf32>
    %cst_19 = arith.constant 1.000000e-01 : f32
    %40 = vector.broadcast %cst_19 : f32 to vector<8x128xf32>
    %41 = arith.mulf %40, %39 : vector<8x128xf32>
    %42 = arith.maximumf %39, %41 : vector<8x128xf32>
    %43 = arith.truncf %42 : vector<8x128xf32> to vector<8x128xbf16>
    %c0_20 = arith.constant 0 : index
    %c0_21 = arith.constant 0 : index
    %c128_22 = arith.constant 128 : index
    %44 = vector.load %arg7[%c0_20, %c0_21, %c128_22] : memref<1x8x384xbf16, #tpu.memory_space<vmem>>, vector<1x8x128xbf16>
    %45 = vector.shape_cast %44 : vector<1x8x128xbf16> to vector<8x128xbf16>
    %46 = vector.shape_cast %43 : vector<8x128xbf16> to vector<1x8x128xbf16>
    tpu.vector_store %arg7[%c0_20, %c0_21, %c128_22], %46 {strides = array<i32>} : memref<1x8x384xbf16, #tpu.memory_space<vmem>>, vector<1x8x128xbf16>,
    %47 = vector.broadcast %28 : vector<8x1xf32> to vector<8x128xf32>
    %48 = arith.mulf %14, %47 : vector<8x128xf32>
    %cst_23 = arith.constant 1.000000e-01 : f32
    %49 = vector.broadcast %cst_23 : f32 to vector<8x128xf32>
    %50 = arith.mulf %49, %48 : vector<8x128xf32>
    %51 = arith.maximumf %48, %50 : vector<8x128xf32>
    %52 = arith.truncf %51 : vector<8x128xf32> to vector<8x128xbf16>
    %c0_24 = arith.constant 0 : index
    %c0_25 = arith.constant 0 : index
    %c256 = arith.constant 256 : index
    %53 = vector.load %arg7[%c0_24, %c0_25, %c256] : memref<1x8x384xbf16, #tpu.memory_space<vmem>>, vector<1x8x128xbf16>
    %54 = vector.shape_cast %53 : vector<1x8x128xbf16> to vector<8x128xbf16>
    %55 = vector.shape_cast %52 : vector<8x128xbf16> to vector<1x8x128xbf16>
    tpu.vector_store %arg7[%c0_24, %c0_25, %c256], %55 {strides = array<i32>} : memref<1x8x384xbf16, #tpu.memory_space<vmem>>, vector<1x8x128xbf16>,
    return
  }
  func.func @transform_0(%arg0: i32, %arg1: i32) -> (i32, i32, i32) {
    %c0_i32 = arith.constant 0 : i32
    %c0_i32_0 = arith.constant 0 : i32
    %c0_i32_1 = arith.constant 0 : i32
    return %arg0, %c0_i32, %c0_i32_0 : i32, i32, i32
  }
  func.func @transform_1(%arg0: i32, %arg1: i32) -> (i32, i32, i32) {
    %c0_i32 = arith.constant 0 : i32
    %c0_i32_0 = arith.constant 0 : i32
    return %arg0, %arg1, %c0_i32 : i32, i32, i32
  }
  func.func @transform_2(%arg0: i32, %arg1: i32) -> (i32, i32, i32) {
    %c0_i32 = arith.constant 0 : i32
    %c0_i32_0 = arith.constant 0 : i32
    return %arg0, %arg1, %c0_i32 : i32, i32, i32
  }
  func.func @transform_3(%arg0: i32, %arg1: i32) -> (i32, i32) {
    %c0_i32 = arith.constant 0 : i32
    %c0_i32_0 = arith.constant 0 : i32
    %c0_i32_1 = arith.constant 0 : i32
    return %c0_i32, %c0_i32_0 : i32, i32
  }
  func.func @transform_4(%arg0: i32, %arg1: i32) -> (i32, i32) {
    %c0_i32 = arith.constant 0 : i32
    %c0_i32_0 = arith.constant 0 : i32
    %c0_i32_1 = arith.constant 0 : i32
    return %c0_i32, %c0_i32_0 : i32, i32
  }
  func.func @transform_5(%arg0: i32, %arg1: i32) -> (i32, i32, i32) {
    %c0_i32 = arith.constant 0 : i32
    %c0_i32_0 = arith.constant 0 : i32
    return %arg0, %arg1, %c0_i32 : i32, i32, i32
  }
}

module attributes {stable_mosaic.version = 11 : i64} {
  func.func @_webgnn_conv_kernel(%arg0: i32, %arg1: i32, %arg2: memref<1x8x384xbf16, #tpu.memory_space<vmem>>, %arg3: memref<1x8x8xbf16, #tpu.memory_space<vmem>>, %arg4: memref<1x8x8xbf16, #tpu.memory_space<vmem>>, %arg5: memref<384x384xbf16, #tpu.memory_space<vmem>>, %arg6: memref<1x384xf32, #tpu.memory_space<vmem>>, %arg7: memref<1x8x384xbf16, #tpu.memory_space<vmem>>, %arg8: memref<8x256xbf16, #tpu.memory_space<vmem>>, %arg9: memref<8x128xf32, #tpu.memory_space<vmem>>) attributes {dimension_semantics = [#tpu.dimension_semantics<parallel>, #tpu.dimension_semantics<arbitrary>], iteration_bounds = array<i64: 2, 1>, scalar_prefetch = 0 : i64, scratch_operands = 2 : i64, tpu.core_type = #tpu.core_type<tc>, window_params = [{transform_indices = @transform_0, window_bounds = array<i64: 1, 8, 384>}, {transform_indices = @transform_1, window_bounds = array<i64: 1, 8, 8>}, {transform_indices = @transform_2, window_bounds = array<i64: 1, 8, 8>}, {pipeline_mode = #tpu.pipeline_mode<synchronous>, transform_indices = @transform_3, window_bounds = array<i64: 384, 384>}, {pipeline_mode = #tpu.pipeline_mode<synchronous>, transform_indices = @transform_4, window_bounds = array<i64: 1, 384>}, {transform_indices = @transform_5, window_bounds = array<i64: 1, 8, 384>}]} {
    %c0_i32 = arith.constant 0 : i32
    %0 = arith.cmpi eq, %arg1, %c0_i32 : i32
    %1 = arith.extui %0 : i1 to i32
    %c0_i32_0 = arith.constant 0 : i32
    %2 = arith.cmpi ne, %1, %c0_i32_0 : i32
    scf.if %2 {
      %c0_26 = arith.constant 0 : index
      %c0_27 = arith.constant 0 : index
      %c0_28 = arith.constant 0 : index
      %56 = vector.load %arg2[%c0_26, %c0_27, %c0_28] : memref<1x8x384xbf16, #tpu.memory_space<vmem>>, vector<1x8x384xbf16>
      %57 = vector.shape_cast %56 : vector<1x8x384xbf16> to vector<8x384xbf16>
      %c0_29 = arith.constant 0 : index
      %c0_30 = arith.constant 0 : index
      %58 = vector.load %arg5[%c0_29, %c0_30] : memref<384x384xbf16, #tpu.memory_space<vmem>>, vector<384x384xbf16>
      %cst_31 = arith.constant dense<0.000000e+00> : vector<8x384xf32>
      %59 = tpu.matmul %57, %58, %cst_31 {dimension_numbers = #tpu.dot_dimension_numbers<[1], [0], [0], [1], [0, 0, 1, 1], [], []>} : vector<8x384xbf16>, vector<384x384xbf16>, vector<8x384xf32> -> vector<8x384xf32>
      %c0_32 = arith.constant 0 : index
      %c0_33 = arith.constant 0 : index
      %60 = vector.load %arg6[%c0_32, %c0_33] : memref<1x384xf32, #tpu.memory_space<vmem>>, vector<1x384xf32>
      %61 = vector.broadcast %60 : vector<1x384xf32> to vector<8x384xf32>
      %62 = arith.addf %59, %61 : vector<8x384xf32>
      %63 = vector.extract_strided_slice %62 {offsets = [0, 0], sizes = [8, 256], strides = [1, 1]} : vector<8x384xf32> to vector<8x256xf32>
      %64 = arith.truncf %63 : vector<8x256xf32> to vector<8x256xbf16>
      %c0_34 = arith.constant 0 : index
      %c0_35 = arith.constant 0 : index
      %65 = vector.load %arg8[%c0_34, %c0_35] : memref<8x256xbf16, #tpu.memory_space<vmem>>, vector<8x256xbf16>
      tpu.vector_store %arg8[%c0_34, %c0_35], %64 {strides = array<i32>} : memref<8x256xbf16, #tpu.memory_space<vmem>>, vector<8x256xbf16>,
      %66 = vector.extract_strided_slice %62 {offsets = [0, 256], sizes = [8, 128], strides = [1, 1]} : vector<8x384xf32> to vector<8x128xf32>
      %c0_36 = arith.constant 0 : index
      %c0_37 = arith.constant 0 : index
      %67 = vector.load %arg9[%c0_36, %c0_37] : memref<8x128xf32, #tpu.memory_space<vmem>>, vector<8x128xf32>
      tpu.vector_store %arg9[%c0_36, %c0_37], %66 {strides = array<i32>} : memref<8x128xf32, #tpu.memory_space<vmem>>, vector<8x128xf32>,
    } else {
    }
    %c0 = arith.constant 0 : index
    %c0_1 = arith.constant 0 : index
    %c0_2 = arith.constant 0 : index
    %3 = vector.load %arg3[%c0, %c0_1, %c0_2] : memref<1x8x8xbf16, #tpu.memory_space<vmem>>, vector<1x8x8xbf16>
    %4 = vector.shape_cast %3 : vector<1x8x8xbf16> to vector<8x8xbf16>
    %c0_3 = arith.constant 0 : index
    %c0_4 = arith.constant 0 : index
    %5 = vector.load %arg8[%c0_3, %c0_4] : memref<8x256xbf16, #tpu.memory_space<vmem>>, vector<8x128xbf16>
    %cst = arith.constant dense<0.000000e+00> : vector<8x128xf32>
    %6 = tpu.matmul %4, %5, %cst {dimension_numbers = #tpu.dot_dimension_numbers<[1], [0], [0], [1], [0, 0, 1, 1], [], []>} : vector<8x8xbf16>, vector<8x128xbf16>, vector<8x128xf32> -> vector<8x128xf32>
    %c0_5 = arith.constant 0 : index
    %c0_6 = arith.constant 0 : index
    %c0_7 = arith.constant 0 : index
    %7 = vector.load %arg4[%c0_5, %c0_6, %c0_7] : memref<1x8x8xbf16, #tpu.memory_space<vmem>>, vector<1x8x8xbf16>
    %8 = vector.shape_cast %7 : vector<1x8x8xbf16> to vector<8x8xbf16>
    %c0_8 = arith.constant 0 : index
    %c128 = arith.constant 128 : index
    %9 = vector.load %arg8[%c0_8, %c128] : memref<8x256xbf16, #tpu.memory_space<vmem>>, vector<8x128xbf16>
    %cst_9 = arith.constant dense<0.000000e+00> : vector<8x128xf32>
    %10 = tpu.matmul %8, %9, %cst_9 {dimension_numbers = #tpu.dot_dimension_numbers<[1], [0], [0], [1], [0, 0, 1, 1], [], []>} : vector<8x8xbf16>, vector<8x128xbf16>, vector<8x128xf32> -> vector<8x128xf32>
    %c8_i32 = arith.constant 8 : i32
    %11 = arith.muli %arg1, %c8_i32 : i32
    %12 = tpu.assume_multiple %11, 8 : i32
    %13 = arith.index_cast %12 : i32 to index
    %c0_10 = arith.constant 0 : index
    %14 = vector.load %arg9[%13, %c0_10] : memref<8x128xf32, #tpu.memory_space<vmem>>, vector<8x128xf32>
    %15 = arith.mulf %6, %6 : vector<8x128xf32>
    %cst_11 = arith.constant dense<0.000000e+00> : vector<8xf32>
    %16 = vector.multi_reduction <add>, %15, %cst_11 [1] : vector<8x128xf32> to vector<8xf32>
    %17 = vector.shape_cast %16 : vector<8xf32> to vector<8x1xf32>
    %18 = arith.mulf %10, %10 : vector<8x128xf32>
    %cst_12 = arith.constant dense<0.000000e+00> : vector<8xf32>
    %19 = vector.multi_reduction <add>, %18, %cst_12 [1] : vector<8x128xf32> to vector<8xf32>
    %20 = vector.shape_cast %19 : vector<8xf32> to vector<8x1xf32>
    %21 = arith.addf %17, %20 : vector<8x1xf32>
    %22 = arith.mulf %14, %14 : vector<8x128xf32>
    %cst_13 = arith.constant dense<0.000000e+00> : vector<8xf32>
    %23 = vector.multi_reduction <add>, %22, %cst_13 [1] : vector<8x128xf32> to vector<8xf32>
    %24 = vector.shape_cast %23 : vector<8xf32> to vector<8x1xf32>
    %25 = arith.addf %21, %24 : vector<8x1xf32>
    %cst_14 = arith.constant 1.000000e-24 : f32
    %26 = vector.broadcast %cst_14 : f32 to vector<8x1xf32>
    %27 = arith.maximumf %25, %26 : vector<8x1xf32>
    %28 = math.rsqrt %27 : vector<8x1xf32>
    %29 = vector.broadcast %28 : vector<8x1xf32> to vector<8x128xf32>
    %30 = arith.mulf %6, %29 : vector<8x128xf32>
    %cst_15 = arith.constant 1.000000e-01 : f32
    %31 = vector.broadcast %cst_15 : f32 to vector<8x128xf32>
    %32 = arith.mulf %31, %30 : vector<8x128xf32>
    %33 = arith.maximumf %30, %32 : vector<8x128xf32>
    %34 = arith.truncf %33 : vector<8x128xf32> to vector<8x128xbf16>
    %c0_16 = arith.constant 0 : index
    %c0_17 = arith.constant 0 : index
    %c0_18 = arith.constant 0 : index
    %35 = vector.load %arg7[%c0_16, %c0_17, %c0_18] : memref<1x8x384xbf16, #tpu.memory_space<vmem>>, vector<1x8x128xbf16>
    %36 = vector.shape_cast %35 : vector<1x8x128xbf16> to vector<8x128xbf16>
    %37 = vector.shape_cast %34 : vector<8x128xbf16> to vector<1x8x128xbf16>
    tpu.vector_store %arg7[%c0_16, %c0_17, %c0_18], %37 {strides = array<i32>} : memref<1x8x384xbf16, #tpu.memory_space<vmem>>, vector<1x8x128xbf16>,
    %38 = vector.broadcast %28 : vector<8x1xf32> to vector<8x128xf32>
    %39 = arith.mulf %10, %38 : vector<8x128xf32>
    %cst_19 = arith.constant 1.000000e-01 : f32
    %40 = vector.broadcast %cst_19 : f32 to vector<8x128xf32>
    %41 = arith.mulf %40, %39 : vector<8x128xf32>
    %42 = arith.maximumf %39, %41 : vector<8x128xf32>
    %43 = arith.truncf %42 : vector<8x128xf32> to vector<8x128xbf16>
    %c0_20 = arith.constant 0 : index
    %c0_21 = arith.constant 0 : index
    %c128_22 = arith.constant 128 : index
    %44 = vector.load %arg7[%c0_20, %c0_21, %c128_22] : memref<1x8x384xbf16, #tpu.memory_space<vmem>>, vector<1x8x128xbf16>
    %45 = vector.shape_cast %44 : vector<1x8x128xbf16> to vector<8x128xbf16>
    %46 = vector.shape_cast %43 : vector<8x128xbf16> to vector<1x8x128xbf16>
    tpu.vector_store %arg7[%c0_20, %c0_21, %c128_22], %46 {strides = array<i32>} : memref<1x8x384xbf16, #tpu.memory_space<vmem>>, vector<1x8x128xbf16>,
    %47 = vector.broadcast %28 : vector<8x1xf32> to vector<8x128xf32>
    %48 = arith.mulf %14, %47 : vector<8x128xf32>
    %cst_23 = arith.constant 1.000000e-01 : f32
    %49 = vector.broadcast %cst_23 : f32 to vector<8x128xf32>
    %50 = arith.mulf %49, %48 : vector<8x128xf32>
    %51 = arith.maximumf %48, %50 : vector<8x128xf32>
    %52 = arith.truncf %51 : vector<8x128xf32> to vector<8x128xbf16>
    %c0_24 = arith.constant 0 : index
    %c0_25 = arith.constant 0 : index
    %c256 = arith.constant 256 : index
    %53 = vector.load %arg7[%c0_24, %c0_25, %c256] : memref<1x8x384xbf16, #tpu.memory_space<vmem>>, vector<1x8x128xbf16>
    %54 = vector.shape_cast %53 : vector<1x8x128xbf16> to vector<8x128xbf16>
    %55 = vector.shape_cast %52 : vector<8x128xbf16> to vector<1x8x128xbf16>
    tpu.vector_store %arg7[%c0_24, %c0_25, %c256], %55 {strides = array<i32>} : memref<1x8x384xbf16, #tpu.memory_space<vmem>>, vector<1x8x128xbf16>,
    return
  }
  func.func @transform_0(%arg0: i32, %arg1: i32) -> (i32, i32, i32) {
    %c0_i32 = arith.constant 0 : i32
    %c0_i32_0 = arith.constant 0 : i32
    %c0_i32_1 = arith.constant 0 : i32
    return %arg0, %c0_i32, %c0_i32_0 : i32, i32, i32
  }
  func.func @transform_1(%arg0: i32, %arg1: i32) -> (i32, i32, i32) {
    %c0_i32 = arith.constant 0 : i32
    %c0_i32_0 = arith.constant 0 : i32
    return %arg0, %arg1, %c0_i32 : i32, i32, i32
  }
  func.func @transform_2(%arg0: i32, %arg1: i32) -> (i32, i32, i32) {
    %c0_i32 = arith.constant 0 : i32
    %c0_i32_0 = arith.constant 0 : i32
    return %arg0, %arg1, %c0_i32 : i32, i32, i32
  }
  func.func @transform_3(%arg0: i32, %arg1: i32) -> (i32, i32) {
    %c0_i32 = arith.constant 0 : i32
    %c0_i32_0 = arith.constant 0 : i32
    %c0_i32_1 = arith.constant 0 : i32
    return %c0_i32, %c0_i32_0 : i32, i32
  }
  func.func @transform_4(%arg0: i32, %arg1: i32) -> (i32, i32) {
    %c0_i32 = arith.constant 0 : i32
    %c0_i32_0 = arith.constant 0 : i32
    %c0_i32_1 = arith.constant 0 : i32
    return %c0_i32, %c0_i32_0 : i32, i32
  }
  func.func @transform_5(%arg0: i32, %arg1: i32) -> (i32, i32, i32) {
    %c0_i32 = arith.constant 0 : i32
    %c0_i32_0 = arith.constant 0 : i32
    return %arg0, %arg1, %c0_i32 : i32, i32, i32
  }
}

module attributes {stable_mosaic.version = 11 : i64} {
  func.func @_decoder_kernel(%arg0: i32, %arg1: memref<4x384xbf16, #tpu.memory_space<vmem>>, %arg2: memref<384x128xbf16, #tpu.memory_space<vmem>>, %arg3: memref<128x128xbf16, #tpu.memory_space<vmem>>, %arg4: memref<2x128xf32, #tpu.memory_space<vmem>>) attributes {dimension_semantics = [#tpu.dimension_semantics<arbitrary>], iteration_bounds = array<i64: 1>, scalar_prefetch = 0 : i64, scratch_operands = 0 : i64, tpu.core_type = #tpu.core_type<tc>, window_params = [{pipeline_mode = #tpu.pipeline_mode<synchronous>, transform_indices = @transform_0, window_bounds = array<i64: 4, 384>}, {pipeline_mode = #tpu.pipeline_mode<synchronous>, transform_indices = @transform_1, window_bounds = array<i64: 384, 128>}, {pipeline_mode = #tpu.pipeline_mode<synchronous>, transform_indices = @transform_2, window_bounds = array<i64: 128, 128>}, {pipeline_mode = #tpu.pipeline_mode<synchronous>, transform_indices = @transform_3, window_bounds = array<i64: 2, 128>}]} {
    %c0 = arith.constant 0 : index
    %c0_0 = arith.constant 0 : index
    %0 = vector.load %arg1[%c0, %c0_0] : memref<4x384xbf16, #tpu.memory_space<vmem>>, vector<4x384xbf16>
    %c0_1 = arith.constant 0 : index
    %c0_2 = arith.constant 0 : index
    %1 = vector.load %arg2[%c0_1, %c0_2] : memref<384x128xbf16, #tpu.memory_space<vmem>>, vector<384x128xbf16>
    %cst = arith.constant dense<0.000000e+00> : vector<4x128xf32>
    %2 = tpu.matmul %0, %1, %cst {dimension_numbers = #tpu.dot_dimension_numbers<[1], [0], [0], [1], [0, 0, 1, 1], [], []>} : vector<4x384xbf16>, vector<384x128xbf16>, vector<4x128xf32> -> vector<4x128xf32>
    %3 = vector.extract_strided_slice %2 {offsets = [0, 0], sizes = [2, 128], strides = [1, 1]} : vector<4x128xf32> to vector<2x128xf32>
    %4 = vector.extract_strided_slice %2 {offsets = [2, 0], sizes = [2, 128], strides = [1, 1]} : vector<4x128xf32> to vector<2x128xf32>
    %5 = arith.truncf %3 : vector<2x128xf32> to vector<2x128xbf16>
    %c0_3 = arith.constant 0 : index
    %c0_4 = arith.constant 0 : index
    %6 = vector.load %arg3[%c0_3, %c0_4] : memref<128x128xbf16, #tpu.memory_space<vmem>>, vector<128x128xbf16>
    %cst_5 = arith.constant dense<0.000000e+00> : vector<2x128xf32>
    %7 = tpu.matmul %5, %6, %cst_5 {dimension_numbers = #tpu.dot_dimension_numbers<[1], [0], [0], [1], [0, 0, 1, 1], [], []>} : vector<2x128xbf16>, vector<128x128xbf16>, vector<2x128xf32> -> vector<2x128xf32>
    %8 = arith.mulf %7, %4 : vector<2x128xf32>
    %cst_6 = arith.constant dense<0.000000e+00> : vector<2xf32>
    %9 = vector.multi_reduction <add>, %8, %cst_6 [1] : vector<2x128xf32> to vector<2xf32>
    %10 = vector.shape_cast %9 : vector<2xf32> to vector<2x1xf32>
    %11 = vector.shape_cast %10 : vector<2x1xf32> to vector<2x1xf32>
    %12 = vector.broadcast %11 : vector<2x1xf32> to vector<2x128xf32>
    %c0_7 = arith.constant 0 : index
    %c0_8 = arith.constant 0 : index
    %13 = vector.load %arg4[%c0_7, %c0_8] : memref<2x128xf32, #tpu.memory_space<vmem>>, vector<2x128xf32>
    tpu.vector_store %arg4[%c0_7, %c0_8], %12 {strides = array<i32>} : memref<2x128xf32, #tpu.memory_space<vmem>>, vector<2x128xf32>,
    return
  }
  func.func @transform_0(%arg0: i32) -> (i32, i32) {
    %c0_i32 = arith.constant 0 : i32
    %c0_i32_0 = arith.constant 0 : i32
    %c0_i32_1 = arith.constant 0 : i32
    return %c0_i32, %c0_i32_0 : i32, i32
  }
  func.func @transform_1(%arg0: i32) -> (i32, i32) {
    %c0_i32 = arith.constant 0 : i32
    %c0_i32_0 = arith.constant 0 : i32
    %c0_i32_1 = arith.constant 0 : i32
    return %c0_i32, %c0_i32_0 : i32, i32
  }
  func.func @transform_2(%arg0: i32) -> (i32, i32) {
    %c0_i32 = arith.constant 0 : i32
    %c0_i32_0 = arith.constant 0 : i32
    %c0_i32_1 = arith.constant 0 : i32
    return %c0_i32, %c0_i32_0 : i32, i32
  }
  func.func @transform_3(%arg0: i32) -> (i32, i32) {
    %c0_i32 = arith.constant 0 : i32
    %c0_i32_0 = arith.constant 0 : i32
    %c0_i32_1 = arith.constant 0 : i32
    return %c0_i32, %c0_i32_0 : i32, i32
  }
}

</mosaic_0001>

<bundles_post_ra>
// kernel: tile.33
= control target key start
LH: loop header
LB: loop body
LE: loop exit
PB: predicated region body
PF: predicated region fallthrough
CT: control target
= control target key end

     0   :  { %s22_s0 = inlined_call_operand.vmem [shape: f32[12], index: 0, kind: input, shape index: {}]   ;;  %s23_s1 = inlined_call_operand.vmem [shape: f32[2,12], index: 1, kind: output, shape index: {}]  }
   0x1   :  { %v4_v0 = vld [vmem:[%s22_s0] ss:$0 sm:$0xff] }
   0x2   :  { %5 = vst [vmem:[%s23_s1] sm:$0x3] %v4_v0 }

// kernel: tile.34
= control target key start
LH: loop header
LB: loop body
LE: loop exit
PB: predicated region body
PF: predicated region fallthrough
CT: control target
= control target key end

     0   :  { %vm7_vm0 = vcmask 97280   ;;  %vm13_vm1 = vcmask 195680   ;;  %s39_s0 = inlined_call_operand.vmem [shape: f32[2,12], index: 0, kind: input, shape index: {}]   ;;  %s40_s1 = inlined_call_operand.vmem [shape: f32[24], index: 1, kind: output, shape index: {}]  }
   0x1   :  { %v4_v0 = vld [vmem:[%s39_s0] sm:$0x3]  ;;  %s22_s0 = smov 12  }
   0x2   :  { %5 = vst [vmem:[#allocation1] sm:$0x3] %v4_v0 }
   0x9   :  { %v10_v1 = vld [vmem:[#allocation1 + $0x1] sm:$0x1]   ;;  %v6_v2 = vld [vmem:[#allocation1] sm:$0x1]  }
   0xa   :  { %11 = vrot.lane.b32.xlu0 %v10_v1, %s22_s0  ;;  %8 = vst.msk [vmem:[#allocation0] sm:$0x1] %vm7_vm0, %v6_v2  }
  0x7c   :  { %v12_v3 = vpop.permute.xlu0 %11  }
  0x7d   :  { %14 = vst.msk [vmem:[#allocation0] sm:$0x1] %vm13_vm1, %v12_v3  }
  0x84   :  { %v18_v4 = vld [vmem:[#allocation0] sm:$0x1] }
  0x85   :  { %20 = vst [vmem:[%s40_s1] sm:$0x1] %v18_v4 }

// kernel: neg.7
= control target key start
LH: loop header
LB: loop body
LE: loop exit
PB: predicated region body
PF: predicated region fallthrough
CT: control target
= control target key end

     0   :  { %s24_s0 = inlined_call_operand.vmem [shape: f32[384], index: 0, kind: input, shape index: {}]   ;;  %s25_s1 = inlined_call_operand.vmem [shape: f32[384], index: 1, kind: output, shape index: {}]  }
   0x1   :  { %v2_v0 = vld [vmem:[%s24_s0] sm:$0x7] }
   0x2   :  { %v5_v1 = vxor.u32 2147483648, %v2_v0 }
   0x4   :  { %7 = vst [vmem:[%s25_s1] sm:$0xf] %v5_v1 }

// kernel: webgnn_decoder_forward.4
= control target key start
LH: loop header
LB: loop body
LE: loop exit
PB: predicated region body
PF: predicated region fallthrough
CT: control target
= control target key end

     0   :  { %s1021_s18 = smov 0   ;;  %s1023_s19 = smov 0   ;;  %s1163_s0 = inlined_call_operand.vmem [shape: bf16[2,8,128], index: 0, kind: input, shape index: {}]   ;;  %s1164_s1 = inlined_call_operand.vmem [shape: bf16[2,8,8], index: 1, kind: input, shape index: {}]   ;;  %s1165_s2 = inlined_call_operand.vmem [shape: bf16[2,8,8], index: 2, kind: input, shape index: {}]   ;;  %s1166_s3 = inlined_call_operand.vmem [shape: bf16[128,384], index: 3, kind: input, shape index: {}]   ;;  %s1167_s4 = inlined_call_operand.vmem [shape: f32[1,384], index: 4, kind: input, shape index: {}]   ;;  %s1168_s5 = inlined_call_operand.vmem [shape: bf16[2,8,384], index: 5, kind: output, shape index: {}]  }
   0x1   :  { %s1025_s20 = smov 0  }
   0x2 LB: > { %s27_s21 = sadd.s32 1, %s982_s19  ;;  %p822_p0 = scmp.ge.s32.totalorder %s986_s20, 1  ;;  %s986_s20 = sphi %s1025_s20, %s15_s20   ;;  %s982_s19 = sphi %s1023_s19, %s1170_s19   ;;  %s978_s18 = sphi %s1021_s18, %s1169_s18  }
   0x3   : > { %p29_p1 = scmp.ge.s32.totalorder %s27_s21, 2  ;;  %p228_p2 = scmp.lt.s32.totalorder %s986_s20, 3 }
   0x5   : > { %s1172_s21 = smov (%p29_p1, %s27_s21), 0  ;;  %p229_p3 = pnand %p822_p0, %p228_p2 }
   0x6   : > { %v930_v0 = vld [vmem:[%s1166_s3 + $0x4] ss:$12 sps:$4 sm:$0xff] (!%p229_p3)   ;;  %v932_v1 = vld [vmem:[%s1166_s3] ss:$12 sps:$4 sm:$0xff] (!%p229_p3)   ;;  %v988_v2 = vmov (!%p229_p3), 0   ;;  %v989_v4 = vmov (!%p229_p3), 0.0   ;;  %v340_v27 = vlaneseq (!%p229_p3) }
   0x7   : > { %232 = sbr.rel (%p229_p3) target bundleno = 655 (0x28f), region = 40  ;;  %515 = vmatprep.mubr.bf16.mxu0 (!%p229_p3), %v988_v2  ;;  %483 = vmatprep.subr.bf16.mxu0 (!%p229_p3), %v930_v0  ;;  %v933_v3 = vld [vmem:[%s1166_s3 + $0x1c] ss:$12 sps:$4 sm:$0xff] (!%p229_p3)   ;;  %v935_v5 = vld [vmem:[%s1166_s3 + $0x18] ss:$12 sps:$4 sm:$0xff] (!%p229_p3)   ;;  %p273_p4 = scmp.lt.s32.totalorder (!%p229_p3), %s978_s18, 1 }
   0x8   : > { %870 = vmatprep.subr.bf16.mxu1 (!%p229_p3), %v989_v4  ;;  %484 = vmatpush1.bf16.msra.mxu0 (!%p229_p3), %v932_v1  ;;  %v936_v6 = vld [vmem:[%s1166_s3 + $0x34] ss:$12 sps:$4 sm:$0xff] (!%p229_p3)   ;;  %v938_v7 = vld [vmem:[%s1166_s3 + $0x30] ss:$12 sps:$4 sm:$0xff] (!%p229_p3)   ;;  %v939_v8 = vld [vmem:[%s1166_s3 + $0x4c] ss:$12 sps:$4 sm:$0xff] (!%p229_p3)  }
   0x9   : > { %485 = vmatprep.subr.bf16.mxu0 (!%p229_p3), %v933_v3  ;;  %v941_v9 = vld [vmem:[%s1166_s3 + $0x48] ss:$12 sps:$4 sm:$0xff] (!%p229_p3)   ;;  %v942_v11 = vld [vmem:[%s1166_s3 + $0x64] ss:$12 sps:$4 sm:$0xff] (!%p229_p3)   ;;  %v955_v12 = vld [vmem:[%s1166_s3 + $0x20] ss:$12 sps:$4 sm:$0xff] (!%p229_p3)  }
   0xa   : > { %v954_v10 = vld [vmem:[%s1166_s3 + $0x8] ss:$12 sps:$4 sm:$0xff] (!%p229_p3)   ;;  %v944_v13 = vld [vmem:[%s1166_s3 + $0x60] ss:$12 sps:$4 sm:$0xff] (!%p229_p3)   ;;  %v956_v15 = vld [vmem:[%s1166_s3 + $0x38] ss:$12 sps:$4 sm:$0xff] (!%p229_p3)  }
   0xb   : > { %871 = vmatpush3.bf16.msra.mxu1 (!%p229_p3), %v954_v10  ;;  %v945_v14 = vld [vmem:[%s1166_s3 + $0x7c] ss:$12 sps:$4 sm:$0xff] (!%p229_p3)   ;;  %v947_v16 = vld [vmem:[%s1166_s3 + $0x78] ss:$12 sps:$4 sm:$0xff] (!%p229_p3)   ;;  %v948_v17 = vld [vmem:[%s1166_s3 + $0x94] ss:$12 sps:$4 sm:$0xff] (!%p229_p3)  }
   0xc   : > { %486 = vmatpush1.bf16.msra.mxu0 (!%p229_p3), %v935_v5  ;;  %872 = vmatprep.subr.bf16.mxu1 (!%p229_p3), %v989_v4  ;;  %v957_v18 = vld [vmem:[%s1166_s3 + $0x50] ss:$12 sps:$4 sm:$0xff] (!%p229_p3)   ;;  %v951_v20 = vld [vmem:[%s1166_s3 + $0xac] ss:$12 sps:$4 sm:$0xff] (!%p229_p3)   ;;  %v958_v21 = vld [vmem:[%s1166_s3 + $0x68] ss:$12 sps:$4 sm:$0xff] (!%p229_p3)  }
   0xd   : > { %487 = vmatprep.subr.bf16.mxu0 (!%p229_p3), %v936_v6  ;;  %v950_v19 = vld [vmem:[%s1166_s3 + $0x90] ss:$12 sps:$4 sm:$0xff] (!%p229_p3)   ;;  %v953_v22 = vld [vmem:[%s1166_s3 + $0xa8] ss:$12 sps:$4 sm:$0xff] (!%p229_p3)   ;;  %v959_v24 = vld [vmem:[%s1166_s3 + $0x80] ss:$12 sps:$4 sm:$0xff] (!%p229_p3)  }
   0xe   : > { %s1174_s18 = smov (!%p273_p4, %s978_s18), 1  ;;  %v960_v25 = vld [vmem:[%s1166_s3 + $0x98] ss:$12 sps:$4 sm:$0xff]   ;;  %v961_v26 = vld [vmem:[%s1166_s3 + $0xb0] ss:$12 sps:$4 sm:$0xff]   ;;  %vm990_vm0 = vmmov 0  }
   0xf   : > { %873 = vmatpush3.bf16.msra.mxu1 %v955_v12  ;;  %s1109_s14 = sshll.u32 %s1174_s18, 2  ;;  %886 = vmatprep.mubr.msk.bf16.mxu1 %vm990_vm0, %v989_v4  ;;  %v341_v28 = vshrl.u32 %v340_v27, 7  ;;  %v338_v30 = vld [vmem:[%s1167_s4] sm:$0x7]  ;;  %vm580_vm1 = vcmask 1043456   ;;  %vm576_vm2 = vcmask 64512  }
  0x10   : > { %488 = vmatpush1.bf16.msra.mxu0 %v938_v7  ;;  %874 = vmatprep.subr.bf16.mxu1 %v989_v4  ;;  %s276_s25 = scalar_lea.vmem %s1163_s0, %s1109_s14  ;;  %s283_s11 = scalar_lea.vmem %s1164_s1, %s1109_s14 }
  0x11   : > { %489 = vmatprep.subr.bf16.mxu0 %v939_v8  ;;  %v305_v23 = vld [vmem:[%s276_s25] sm:$0xf]  ;;  %v342_v29 = vsub.s32 0, %v341_v28  ;;  %v346_v31 = vsub.s32 1, %v341_v28  ;;  %s290_s15 = scalar_lea.vmem %s1165_s2, %s1109_s14  ;;  %v350_v47 = vsub.s32 2, %v341_v28  ;;  %s902_s14 = smul.u32 12, %s1174_s18 }
  0x12   : > { %v574_v45 = vld [vmem:[%s283_s11] sm:$0xf] }
  0x13   : > { %875 = vmatpush3.bf16.msra.mxu1 %v956_v15  ;;  %v343_v32 = vrot.slane %v338_v30, %v342_v29  ;;  %v347_v33 = vrot.slane %v338_v30, %v346_v31  ;;  %v624_v46 = vld [vmem:[%s290_s15] sm:$0xf]  ;;  %v351_v48 = vrot.slane %v338_v30, %v350_v47  ;;  %s299_s22 = scalar_lea.vmem %s1168_s5, %s902_s14 }
  0x14   : > { %490 = vmatpush1.bf16.msra.mxu0 %v941_v9  ;;  %876 = vmatprep.subr.bf16.mxu1 %v989_v4 }
  0x15   : > { %491 = vmatprep.subr.bf16.mxu0 %v942_v11 }
  0x17   : > { %877 = vmatpush3.bf16.msra.mxu1 %v957_v18 }
  0x18   : > { %492 = vmatpush1.bf16.msra.mxu0 %v944_v13  ;;  %878 = vmatprep.subr.bf16.mxu1 %v989_v4 }
  0x19   : > { %493 = vmatprep.subr.bf16.mxu0 %v945_v14 }
  0x1b   : > { %879 = vmatpush3.bf16.msra.mxu1 %v958_v21 }
  0x1c   : > { %494 = vmatpush1.bf16.msra.mxu0 %v947_v16  ;;  %880 = vmatprep.subr.bf16.mxu1 %v989_v4 }
  0x1d   : > { %495 = vmatprep.subr.bf16.mxu0 %v948_v17 }
  0x1f   : > { %881 = vmatpush3.bf16.msra.mxu1 %v959_v24 }
  0x20   : > { %496 = vmatpush1.bf16.msra.mxu0 %v950_v19  ;;  %882 = vmatprep.subr.bf16.mxu1 %v989_v4 }
  0x21   : > { %497 = vmatprep.subr.bf16.mxu0 %v951_v20 }
  0x23   : > { %883 = vmatpush3.bf16.msra.mxu1 %v960_v25 }
  0x24   : > { %498 = vmatpush1.bf16.msra.mxu0 %v953_v22  ;;  %884 = vmatprep.subr.bf16.mxu1 %v989_v4 }
  0x25   : > { %890 = vmatprep.subr.bf16.mxu0 %v989_v4 }
  0x27   : > { %516 = vmatmul.mubr.bf16.vlgmr.msra.gmra.mrb[0].mxu0 %v305_v23  ;;  %885 = vmatpush3.bf16.msra.mxu1 %v961_v26 }
  0x28   : > { %892 = vmatprep.mubr.msk.bf16.mxu0 %vm990_vm0, %v989_v4  ;;  %896 = vmatprep.subr.bf16.mxu1 %v989_v4 }
  0x2a   : > { %887 = vmatmul.mubr.bf16.vlgmr.msra.gmra.mrb[0].mxu1 %v305_v23 }
  0x2b   : > { %898 = vmatprep.mubr.msk.bf16.mxu1 %vm990_vm0, %v989_v4 }
  0xfa   : > { %v517_v34 = vpop.f32.mrb[0].mxu0 }
  0xfb   : > { %v518_v35 = vadd.f32 %v517_v34, %v343_v32  ;;  %v519_v36 = vpop.f32.mrb[1].mxu0 }
  0xfc   : > { %v520_v37 = vadd.f32 %v519_v36, %v347_v33  ;;  %v521_v38 = vpop.f32.mrb[2].mxu0 }
  0xfd   : > { %v522_v39 = vpop.f32.mrb[3].mxu0  ;;  %v558_v49 = vpop.f32.mrb[0].mxu1 }
  0xfe   : > { %v856_v40 = vpack.c.bf16 %v520_v37, %v518_v35  ;;  %v888_v50 = vpop.f32.mrb[1].mxu1  ;;  %v559_v51 = vadd.f32 %v558_v49, %v351_v48 }
  0xff   : > { %v561_v52 = vpop.f32.mrb[2].mxu1 }
 0x100   : > { %572 = vst [vmem:[#allocation2] sm:$0xff] %v856_v40  ;;  %v889_v53 = vpop.f32.mrb[3].mxu1  ;;  %v682_v54 = vmul.f32 %v559_v51, %v559_v51 }
 0x102   : > { %683 = vadd.xlane.f32.xlu1 %v682_v54 }
 0x107   : > { %v575_v41 = vld [vmem:[#allocation2] sm:$0xf]  ;;  %v625_v42 = vld [vmem:[#allocation2 + $0x4] sm:$0xf] }
 0x108   : > { %v582_v43 = vsel %vm580_vm1, %v575_v41, 0  ;;  %v630_v44 = vsel %vm580_vm1, %v625_v42, 0 }
 0x109   : > { %891 = vmatpush3.bf16.msra.mxu0 %v582_v43  ;;  %897 = vmatpush3.bf16.msra.mxu1 %v630_v44 }
 0x10c   : > { %893 = vmatmul.mubr.msk.bf16.vlgmr.msra.gmra.mrb[4].mxu0 %vm576_vm2, %v574_v45  ;;  %899 = vmatmul.mubr.msk.bf16.vlgmr.msra.gmra.mrb[4].mxu1 %vm576_vm2, %v624_v46 }
 0x18f   : > { %v684_v4 = vpop.xlane.xlu1 %683 }
 0x1df   : > { %v618_v55 = vpop.f32.mrb[4].mxu0  ;;  %v666_v56 = vpop.f32.mrb[4].mxu1 }
 0x1e0   : > { %v675_v57 = vmul.f32 %v618_v55, %v618_v55  ;;  %v894_v58 = vpop.f32.mrb[5].mxu0  ;;  %v900_v59 = vpop.f32.mrb[5].mxu1  ;;  %v678_v63 = vmul.f32 %v666_v56, %v666_v56 }
 0x1e1   : > { %v621_v60 = vpop.f32.mrb[6].mxu0  ;;  %v669_v61 = vpop.f32.mrb[6].mxu1 }
 0x1e2   : > { %676 = vadd.xlane.f32.xlu0 %v675_v57  ;;  %v895_v62 = vpop.f32.mrb[7].mxu0  ;;  %v901_v0 = vpop.f32.mrb[7].mxu1 }
 0x1e6   : > { %679 = vadd.xlane.f32.xlu0 %v678_v63 }
 0x26f   : > { %v677_v1 = vpop.xlane.xlu0 %676 }
 0x273   : > { %v680_v2 = vpop.xlane.xlu0 %679 }
 0x274   : > { %v681_v3 = vadd.f32 %v680_v2, %v677_v1 }
 0x276   : > { %v685_v5 = vadd.f32 %v684_v4, %v681_v3 }
 0x278   : > { %v686_v6 = vmax.f32 %v685_v5, 1e-24 }
 0x27a   : > { %962 = vrsqrt.f32 %v686_v6 }
 0x284   : > { %v963_v7 = vpop.eup %962 }
 0x285   : > { %v688_v8 = vmul.f32 %v963_v7, %v618_v55  ;;  %v693_v9 = vmul.f32 %v963_v7, %v666_v56  ;;  %v698_v10 = vmul.f32 %v963_v7, %v559_v51 }
 0x287   : > { %v689_v11 = vmul.f32 0.1, %v688_v8  ;;  %v694_v12 = vmul.f32 0.1, %v693_v9  ;;  %v699_v13 = vmul.f32 0.1, %v698_v10 }
 0x289   : > { %v690_v14 = vmax.f32 %v688_v8, %v689_v11  ;;  %v695_v15 = vmax.f32 %v693_v9, %v694_v12  ;;  %v700_v16 = vmax.f32 %v698_v10, %v699_v13 }
 0x28b   : > { %v691_v17 = vpack.c.bf16 %v690_v14, %v690_v14  ;;  %v696_v18 = vpack.c.bf16 %v695_v15, %v695_v15  ;;  %v701_v19 = vpack.c.bf16 %v700_v16, %v700_v16 }
 0x28d   : > { %692 = vst [vmem:[%s299_s22] sm:$0xf] %v691_v17  ;;  %697 = vst [vmem:[%s299_s22 + $0x4] sm:$0xf] %v696_v18 }
 0x28e   : > { %702 = vst [vmem:[%s299_s22 + $0x8] sm:$0xf] %v701_v19 }
 0x28f PF: > { %s15_s20 = sadd.s32 1, %s986_s20   ;;  %s1169_s18 = smov %s982_s19 }
 0x290   : > { %p12_p5 = scmp.ge.s32.totalorder %s15_s20, 4   ;;  %s1170_s19 = smov %s1172_s21 }
 0x292   :  { %14 = sbr.rel (!%p12_p5) target bundleno = 2 (0x2), region = 81 }

// kernel: webgnn_decoder_forward.7
= control target key start
LH: loop header
LB: loop body
LE: loop exit
PB: predicated region body
PF: predicated region fallthrough
CT: control target
= control target key end

     0   :  { %v574_v1 = vmov 0.0   ;;  %vm575_vm0 = vmmov 0   ;;  %v576_v14 = vmov 1983009808   ;;  %v69_v16 = vlaneseq  ;;  %s719_s1 = inlined_call_operand.vmem [shape: bf16[384,128], index: 1, kind: input, shape index: {}]   ;;  %s720_s0 = inlined_call_operand.vmem [shape: bf16[4,384], index: 0, kind: input, shape index: {}]   ;;  %s721_s2 = inlined_call_operand.vmem [shape: bf16[128,128], index: 2, kind: input, shape index: {}]   ;;  %s722_s3 = inlined_call_operand.vmem [shape: f32[2,128], index: 3, kind: output, shape index: {}]  }
   0x1   :  { %v541_v0 = vld [vmem:[%s719_s1 + $0x40] sm:$0xff]   ;;  %498 = vmatprep.subr.bf16.mxu1 %v574_v1  ;;  %514 = vmatprep.mubr.msk.bf16.mxu1 %vm575_vm0, %v574_v1  ;;  %v544_v4 = vld [vmem:[%s719_s1 + $0x48] sm:$0xff]   ;;  %v547_v7 = vld [vmem:[%s719_s1 + $0x50] sm:$0xff]   ;;  %v67_v15 = vunpack.c.l.s4 %v576_v14  ;;  %vm417_vm1 = vcmask 1041408  }
   0x2   :  { %v542_v2 = vld [vmem:[%s719_s1] sm:$0xff]   ;;  %458 = vmatprep.subr.bf16.mxu0 %v541_v0  ;;  %v545_v5 = vld [vmem:[%s719_s1 + $0x8] sm:$0xff]   ;;  %v548_v8 = vld [vmem:[%s719_s1 + $0x10] sm:$0xff]   ;;  %v70_v21 = vshrl.u32 %v69_v16, 7 }
   0x3   :  { %v543_v3 = vld [vmem:[%s719_s1 + $0x80] sm:$0xff]   ;;  %459 = vmatpush3.bf16.msra.mxu0 %v542_v2  ;;  %v546_v6 = vld [vmem:[%s719_s1 + $0x88] sm:$0xff]   ;;  %v549_v9 = vld [vmem:[%s719_s1 + $0x90] sm:$0xff]   ;;  %v68_v20 = vunpack.c.0.s8 %v67_v15 }
   0x4   :  { %499 = vmatpush3.bf16.msra.mxu1 %v543_v3  ;;  %460 = vmatprep.subr.bf16.mxu0 %v544_v4  ;;  %v550_v10 = vld [vmem:[%s719_s1 + $0x58] sm:$0xff]   ;;  %v553_v13 = vld [vmem:[%s719_s1 + $0x60] sm:$0xff]   ;;  %v556_v19 = vld [vmem:[%s719_s1 + $0x68] sm:$0xff]  }
   0x5   :  { %500 = vmatprep.subr.bf16.mxu1 %v574_v1  ;;  %v551_v11 = vld [vmem:[%s719_s1 + $0x18] sm:$0xff]   ;;  %v554_v17 = vld [vmem:[%s719_s1 + $0x20] sm:$0xff]   ;;  %v557_v22 = vld [vmem:[%s719_s1 + $0x28] sm:$0xff]   ;;  %v71_v26 = vsub.s32 %v68_v20, %v70_v21 }
   0x6   :  { %v552_v12 = vld [vmem:[%s719_s1 + $0x98] sm:$0xff]   ;;  %v555_v18 = vld [vmem:[%s719_s1 + $0xa0] sm:$0xff]   ;;  %v558_v23 = vld [vmem:[%s719_s1 + $0xa8] sm:$0xff]  }
   0x7   :  { %461 = vmatpush3.bf16.msra.mxu0 %v545_v5  ;;  %v559_v24 = vld [vmem:[%s719_s1 + $0x70] sm:$0xff]   ;;  %v562_v28 = vld [vmem:[%s719_s1 + $0x78] sm:$0xff]   ;;  %v15_v29 = vld [vmem:[%s720_s0] sm:$0x3f] }
   0x8   :  { %501 = vmatpush3.bf16.msra.mxu1 %v546_v6  ;;  %462 = vmatprep.subr.bf16.mxu0 %v547_v7  ;;  %v560_v25 = vld [vmem:[%s719_s1 + $0x30] sm:$0xff]   ;;  %v72_v30 = vrot.slane %v15_v29, %v71_v26  ;;  %v563_v31 = vld [vmem:[%s719_s1 + $0x38] sm:$0xff]   ;;  %v65_v32 = vcombine.high %v15_v29, %v15_v29  ;;  %v566_v36 = vld [vmem:[%s721_s2] sm:$0xff]  }
   0x9   :  { %502 = vmatprep.subr.bf16.mxu1 %v574_v1  ;;  %v561_v27 = vld [vmem:[%s719_s1 + $0xb0] sm:$0xff]   ;;  %v564_v34 = vld [vmem:[%s719_s1 + $0xb8] sm:$0xff]   ;;  %v567_v37 = vld [vmem:[%s721_s2 + $0x8] sm:$0xff]  }
   0xa   :  { %v80_v33 = vcombine.high %v72_v30, %v72_v30  ;;  %v79_v35 = vrot.slane %v65_v32, %v71_v26  ;;  %v568_v38 = vld [vmem:[%s721_s2 + $0x10] sm:$0xff]   ;;  %v569_v39 = vld [vmem:[%s721_s2 + $0x18] sm:$0xff]   ;;  %v570_v40 = vld [vmem:[%s721_s2 + $0x20] sm:$0xff]  }
   0xb   :  { %463 = vmatpush3.bf16.msra.mxu0 %v548_v8  ;;  %v571_v41 = vld [vmem:[%s721_s2 + $0x28] sm:$0xff]   ;;  %v572_v42 = vld [vmem:[%s721_s2 + $0x30] sm:$0xff]   ;;  %v573_v43 = vld [vmem:[%s721_s2 + $0x38] sm:$0xff]  }
   0xc   :  { %503 = vmatpush3.bf16.msra.mxu1 %v549_v9  ;;  %464 = vmatprep.subr.bf16.mxu0 %v550_v10 }
   0xd   :  { %504 = vmatprep.subr.bf16.mxu1 %v574_v1  ;;  %260 = vmatprep.mubr.bf16.mxu0 %v80_v33 }
   0xf   :  { %465 = vmatpush3.bf16.msra.mxu0 %v551_v11 }
  0x10   :  { %505 = vmatpush3.bf16.msra.mxu1 %v552_v12  ;;  %466 = vmatprep.subr.bf16.mxu0 %v553_v13 }
  0x11   :  { %506 = vmatprep.subr.bf16.mxu1 %v574_v1 }
  0x13   :  { %467 = vmatpush3.bf16.msra.mxu0 %v554_v17 }
  0x14   :  { %507 = vmatpush3.bf16.msra.mxu1 %v555_v18  ;;  %468 = vmatprep.subr.bf16.mxu0 %v556_v19 }
  0x15   :  { %508 = vmatprep.subr.bf16.mxu1 %v574_v1 }
  0x17   :  { %469 = vmatpush3.bf16.msra.mxu0 %v557_v22 }
  0x18   :  { %509 = vmatpush3.bf16.msra.mxu1 %v558_v23  ;;  %470 = vmatprep.subr.bf16.mxu0 %v559_v24 }
  0x19   :  { %510 = vmatprep.subr.bf16.mxu1 %v574_v1 }
  0x1b   :  { %471 = vmatpush3.bf16.msra.mxu0 %v560_v25 }
  0x1c   :  { %511 = vmatpush3.bf16.msra.mxu1 %v561_v27  ;;  %472 = vmatprep.subr.bf16.mxu0 %v562_v28 }
  0x1d   :  { %512 = vmatprep.subr.bf16.mxu1 %v574_v1 }
  0x1f   :  { %473 = vmatpush3.bf16.msra.mxu0 %v563_v31 }
  0x20   :  { %513 = vmatpush3.bf16.msra.mxu1 %v564_v34  ;;  %518 = vmatprep.subr.bf16.mxu0 %v574_v1 }
  0x22   :  { %261 = vmatmul.mubr.bf16.vlgmr.msra.gmra.mrb[0].mxu0 %v72_v30 }
  0x23   :  { %515 = vmatmul.mubr.bf16.vlgmr.msra.gmra.mrb[0].mxu1 %v79_v35  ;;  %519 = vmatpush3.bf16.msra.mxu0 %v566_v36 }
  0x24   :  { %520 = vmatprep.subr.bf16.mxu0 %v574_v1  ;;  %534 = vmatprep.mubr.msk.bf16.mxu0 %vm575_vm0, %v574_v1 }
  0x27   :  { %521 = vmatpush3.bf16.msra.mxu0 %v567_v37 }
  0x28   :  { %522 = vmatprep.subr.bf16.mxu0 %v574_v1 }
  0x2b   :  { %523 = vmatpush3.bf16.msra.mxu0 %v568_v38 }
  0x2c   :  { %524 = vmatprep.subr.bf16.mxu0 %v574_v1 }
  0x2f   :  { %525 = vmatpush3.bf16.msra.mxu0 %v569_v39 }
  0x30   :  { %526 = vmatprep.subr.bf16.mxu0 %v574_v1 }
  0x33   :  { %527 = vmatpush3.bf16.msra.mxu0 %v570_v40 }
  0x34   :  { %528 = vmatprep.subr.bf16.mxu0 %v574_v1 }
  0x37   :  { %529 = vmatpush3.bf16.msra.mxu0 %v571_v41 }
  0x38   :  { %530 = vmatprep.subr.bf16.mxu0 %v574_v1 }
  0x3b   :  { %531 = vmatpush3.bf16.msra.mxu0 %v572_v42 }
  0x3c   :  { %532 = vmatprep.subr.bf16.mxu0 %v574_v1 }
  0x3f   :  { %533 = vmatpush3.bf16.msra.mxu0 %v573_v43 }
  0xf5   :  { %v474_v44 = vpop.f32.mrb[0].mxu0 }
  0xf6   :  { %v302_v45 = vpop.f32.mrb[0].mxu1  ;;  %v475_v46 = vpop.f32.mrb[1].mxu0 }
  0xf7   :  { %v476_v47 = vadd.f32 %v475_v46, %v474_v44  ;;  %v516_v48 = vpop.f32.mrb[1].mxu1  ;;  %v477_v49 = vpop.f32.mrb[2].mxu0 }
  0xf8   :  { %v305_v50 = vpop.f32.mrb[2].mxu1  ;;  %v478_v51 = vpop.f32.mrb[3].mxu0 }
  0xf9   :  { %v303_v52 = vadd.f32 %v476_v47, %v302_v45  ;;  %v517_v53 = vpop.f32.mrb[3].mxu1 }
  0xfb   :  { %v308_v54 = vpack.c.bf16 %v303_v52, %v303_v52  ;;  %v414_v55 = vrot.slane %v303_v52, 2 }
  0xfd   :  { %535 = vmatmul.mubr.bf16.vlgmr.msra.gmra.mrb[4].mxu0 %v308_v54 }
 0x1d0   :  { %v407_v56 = vpop.f32.mrb[4].mxu0 }
 0x1d1   :  { %v416_v57 = vmul.f32 %v414_v55, %v407_v56  ;;  %v536_v58 = vpop.f32.mrb[5].mxu0 }
 0x1d2   :  { %v410_v59 = vpop.f32.mrb[6].mxu0 }
 0x1d3   :  { %v537_v60 = vpop.f32.mrb[7].mxu0  ;;  %v418_v61 = vsel %vm417_vm1, %v416_v57, 0.0 }
 0x1d4   :  { %419 = vadd.xlane.f32.xlu0 %v418_v61 }
 0x261   :  { %v420_v62 = vpop.xlane.xlu0 %419 }
 0x262   :  { %421 = vst [vmem:[%s722_s3] sm:$0x3] %v420_v62 }

// kernel: webgnn_decoder_forward.5
= control target key start
LH: loop header
LB: loop body
LE: loop exit
PB: predicated region body
PF: predicated region fallthrough
CT: control target
= control target key end

     0   :  { %s1583_s18 = smov 0   ;;  %s1585_s19 = smov 0   ;;  %s1875_s0 = inlined_call_operand.vmem [shape: bf16[2,8,384], index: 0, kind: input, shape index: {}]   ;;  %s1876_s1 = inlined_call_operand.vmem [shape: bf16[2,8,8], index: 1, kind: input, shape index: {}]   ;;  %s1877_s2 = inlined_call_operand.vmem [shape: bf16[2,8,8], index: 2, kind: input, shape index: {}]   ;;  %s1878_s3 = inlined_call_operand.vmem [shape: bf16[384,384], index: 3, kind: input, shape index: {}]   ;;  %s1879_s4 = inlined_call_operand.vmem [shape: f32[1,384], index: 4, kind: input, shape index: {}]   ;;  %s1880_s5 = inlined_call_operand.vmem [shape: bf16[2,8,384], index: 5, kind: output, shape index: {}]  }
   0x1   :  { %s1587_s20 = smov 0  }
   0x2 LB: > { %s27_s21 = sadd.s32 1, %s1544_s19  ;;  %p1238_p0 = scmp.ge.s32.totalorder %s1548_s20, 1  ;;  %s1548_s20 = sphi %s1587_s20, %s15_s20   ;;  %s1544_s19 = sphi %s1585_s19, %s1882_s19   ;;  %s1540_s18 = sphi %s1583_s18, %s1881_s18  }
   0x3   : > { %p29_p1 = scmp.ge.s32.totalorder %s27_s21, 2  ;;  %p229_p2 = scmp.lt.s32.totalorder %s1548_s20, 3 }
   0x5   : > { %s1884_s21 = smov (%p29_p1, %s27_s21), 0  ;;  %p230_p3 = pnand %p1238_p0, %p229_p2 }
   0x6   : > { %v1425_v0 = vld [vmem:[%s1878_s3 + $0x4] ss:$12 sps:$4 sm:$0xff] (!%p230_p3)   ;;  %v1427_v1 = vld [vmem:[%s1878_s3] ss:$12 sps:$4 sm:$0xff] (!%p230_p3)   ;;  %v1428_v2 = vld [vmem:[%s1878_s3 + $0x1c] ss:$12 sps:$4 sm:$0xff] (!%p230_p3)  }
   0x7   : > { %233 = sbr.rel (%p230_p3) target bundleno = 723 (0x2d3), region = 40  ;;  %818 = vmatprep.subr.bf16.mxu0 (!%p230_p3), %v1425_v0  ;;  %v1430_v3 = vld [vmem:[%s1878_s3 + $0x18] ss:$12 sps:$4 sm:$0xff] (!%p230_p3)   ;;  %v1431_v4 = vld [vmem:[%s1878_s3 + $0x34] ss:$12 sps:$4 sm:$0xff] (!%p230_p3)   ;;  %p275_p4 = scmp.lt.s32.totalorder (!%p230_p3), %s1540_s18, 1 }
   0x8   : > { %819 = vmatpush1.bf16.msra.mxu0 (!%p230_p3), %v1427_v1  ;;  %v1433_v5 = vld [vmem:[%s1878_s3 + $0x30] ss:$12 sps:$4 sm:$0xff] (!%p230_p3)   ;;  %v1434_v6 = vld [vmem:[%s1878_s3 + $0x4c] ss:$12 sps:$4 sm:$0xff] (!%p230_p3)   ;;  %v1436_v7 = vld [vmem:[%s1878_s3 + $0x48] ss:$12 sps:$4 sm:$0xff] (!%p230_p3)  }
   0x9   : > { %820 = vmatprep.subr.bf16.mxu0 (!%p230_p3), %v1428_v2  ;;  %v1437_v8 = vld [vmem:[%s1878_s3 + $0x64] ss:$12 sps:$4 sm:$0xff] (!%p230_p3)   ;;  %v1439_v9 = vld [vmem:[%s1878_s3 + $0x60] ss:$12 sps:$4 sm:$0xff] (!%p230_p3)   ;;  %v1440_v10 = vld [vmem:[%s1878_s3 + $0x7c] ss:$12 sps:$4 sm:$0xff] (!%p230_p3)  }
   0xa   : > { %v1442_v11 = vld [vmem:[%s1878_s3 + $0x78] ss:$12 sps:$4 sm:$0xff] (!%p230_p3)   ;;  %v1443_v12 = vld [vmem:[%s1878_s3 + $0x94] ss:$12 sps:$4 sm:$0xff] (!%p230_p3)   ;;  %v1445_v15 = vld [vmem:[%s1878_s3 + $0x90] ss:$12 sps:$4 sm:$0xff] (!%p230_p3)  }
   0xb   : > { %v1446_v16 = vld [vmem:[%s1878_s3 + $0xac] ss:$12 sps:$4 sm:$0xff] (!%p230_p3)   ;;  %v1448_v17 = vld [vmem:[%s1878_s3 + $0xa8] ss:$12 sps:$4 sm:$0xff] (!%p230_p3)   ;;  %v1449_v18 = vld [vmem:[%s1878_s3 + $0xc4] ss:$12 sps:$4 sm:$0xff] (!%p230_p3)  }
   0xc   : > { %821 = vmatpush1.bf16.msra.mxu0 (!%p230_p3), %v1430_v3  ;;  %v1451_v19 = vld [vmem:[%s1878_s3 + $0xc0] ss:$12 sps:$4 sm:$0xff] (!%p230_p3)   ;;  %v1452_v20 = vld [vmem:[%s1878_s3 + $0xdc] ss:$12 sps:$4 sm:$0xff] (!%p230_p3)   ;;  %v1454_v21 = vld [vmem:[%s1878_s3 + $0xd8] ss:$12 sps:$4 sm:$0xff] (!%p230_p3)  }
   0xd   : > { %822 = vmatprep.subr.bf16.mxu0 (!%p230_p3), %v1431_v4  ;;  %v1500_v22 = vld [vmem:[%s1878_s3 + $0xc8] ss:$12 sps:$4 sm:$0xff] (!%p230_p3)   ;;  %v1502_v25 = vld [vmem:[%s1878_s3 + $0xe0] ss:$12 sps:$4 sm:$0xff] (!%p230_p3)   ;;  %v1504_v27 = vld [vmem:[%s1878_s3 + $0xf8] ss:$12 sps:$4 sm:$0xff] (!%p230_p3)  }
   0xe   : > { %s1886_s18 = smov (!%p275_p4, %s1540_s18), 1  ;;  %v1455_v23 = vld [vmem:[%s1878_s3 + $0xf4] ss:$12 sps:$4 sm:$0xff]   ;;  %1324 = vmatprep.subr.bf16.mxu1 %v1500_v22  ;;  %v1457_v28 = vld [vmem:[%s1878_s3 + $0xf0] ss:$12 sps:$4 sm:$0xff]   ;;  %v1550_v54 = vmov 0.0  }
   0xf   : > { %s1397_s15 = smul.u32 12, %s1886_s18  ;;  %v1501_v24 = vld [vmem:[%s1878_s3 + $0x8] ss:$12 sps:$4 sm:$0xff]   ;;  %v1503_v26 = vld [vmem:[%s1878_s3 + $0x20] ss:$12 sps:$4 sm:$0xff]   ;;  %v1551_v57 = vmov 0  }
  0x10   : > { %823 = vmatpush1.bf16.msra.mxu0 %v1433_v5  ;;  %1325 = vmatpush3.bf16.msra.mxu1 %v1501_v24  ;;  %v1458_v29 = vld [vmem:[%s1878_s3 + $0x10c] ss:$12 sps:$4 sm:$0xff]   ;;  %v1506_v31 = vld [vmem:[%s1878_s3 + $0x110] ss:$12 sps:$4 sm:$0xff]   ;;  %v1460_v32 = vld [vmem:[%s1878_s3 + $0x108] ss:$12 sps:$4 sm:$0xff]  }
  0x11   : > { %824 = vmatprep.subr.bf16.mxu0 %v1434_v6  ;;  %s1642_s26 = scalar_lea.vmem %s1875_s0, %s1397_s15  ;;  %1326 = vmatprep.subr.bf16.mxu1 %v1502_v25  ;;  %v1505_v30 = vld [vmem:[%s1878_s3 + $0x38] ss:$12 sps:$4 sm:$0xff]   ;;  %v1507_v34 = vld [vmem:[%s1878_s3 + $0x50] ss:$12 sps:$4 sm:$0xff]   ;;  %v1508_v35 = vld [vmem:[%s1878_s3 + $0x128] ss:$12 sps:$4 sm:$0xff]   ;;  %s302_s25 = scalar_lea.vmem %s1880_s5, %s1397_s15 }
  0x12   : > { %v1651_v13 = vld [vmem:[%s1642_s26] sm:$0xff]  ;;  %v1464_v37 = vld [vmem:[%s1878_s3 + $0x13c] ss:$12 sps:$4 sm:$0xff]   ;;  %v1470_v45 = vld [vmem:[%s1878_s3 + $0x16c] ss:$12 sps:$4 sm:$0xff]   ;;  %vm1552_vm0 = vmmov 0  }
  0x13   : > { %v1244_v14 = vcombine.high %v1651_v13, %v1651_v13  ;;  %v1461_v33 = vld [vmem:[%s1878_s3 + $0x124] ss:$12 sps:$4 sm:$0xff]   ;;  %v1463_v36 = vld [vmem:[%s1878_s3 + $0x120] ss:$12 sps:$4 sm:$0xff]   ;;  %v1509_v38 = vld [vmem:[%s1878_s3 + $0x68] ss:$12 sps:$4 sm:$0xff]   ;;  %v1243_v51 = vcombine.low %v1651_v13, %v1651_v13 }
  0x14   : > { %825 = vmatpush1.bf16.msra.mxu0 %v1436_v7  ;;  %1327 = vmatpush3.bf16.msra.mxu1 %v1503_v26  ;;  %v1510_v39 = vld [vmem:[%s1878_s3 + $0x140] ss:$12 sps:$4 sm:$0xff]   ;;  %v1466_v40 = vld [vmem:[%s1878_s3 + $0x138] ss:$12 sps:$4 sm:$0xff]   ;;  %v1469_v44 = vld [vmem:[%s1878_s3 + $0x150] ss:$12 sps:$4 sm:$0xff]  }
  0x15   : > { %826 = vmatprep.subr.bf16.mxu0 %v1437_v8  ;;  %850 = vmatprep.mubr.bf16.mxu0 %v1244_v14  ;;  %v1467_v41 = vld [vmem:[%s1878_s3 + $0x154] ss:$12 sps:$4 sm:$0xff]   ;;  %v1512_v43 = vld [vmem:[%s1878_s3 + $0x158] ss:$12 sps:$4 sm:$0xff]   ;;  %v1514_v47 = vld [vmem:[%s1878_s3 + $0x170] ss:$12 sps:$4 sm:$0xff]  }
  0x16   : > { %932 = vmatprep.mubr.bf16.mxu1 %v1244_v14  ;;  %1328 = vmatprep.subr.bf16.mxu1 %v1504_v27  ;;  %v1511_v42 = vld [vmem:[%s1878_s3 + $0x80] ss:$12 sps:$4 sm:$0xff]   ;;  %v1513_v46 = vld [vmem:[%s1878_s3 + $0x98] ss:$12 sps:$4 sm:$0xff]   ;;  %v1472_v48 = vld [vmem:[%s1878_s3 + $0x168] ss:$12 sps:$4 sm:$0xff]  }
  0x17   : > { %v1478_v49 = vld [vmem:[%s1878_s3 + $0x184] ss:$12 sps:$4 sm:$0xff]   ;;  %v1476_v52 = vld [vmem:[%s1878_s3 + $0x180] ss:$12 sps:$4 sm:$0xff]   ;;  %v1481_v53 = vld [vmem:[%s1878_s3 + $0x19c] ss:$12 sps:$4 sm:$0xff]  }
  0x18   : > { %827 = vmatpush1.bf16.msra.mxu0 %v1439_v9  ;;  %1329 = vmatpush3.bf16.msra.mxu1 %v1505_v30  ;;  %v1515_v50 = vld [vmem:[%s1878_s3 + $0xb0] ss:$12 sps:$4 sm:$0xff]   ;;  %v1516_v55 = vld [vmem:[%s1878_s3 + $0x188] ss:$12 sps:$4 sm:$0xff]   ;;  %v1479_v56 = vld [vmem:[%s1878_s3 + $0x198] ss:$12 sps:$4 sm:$0xff]  }
  0x19   : > { %828 = vmatprep.subr.bf16.mxu0 %v1440_v10  ;;  %1330 = vmatprep.subr.bf16.mxu1 %v1506_v31  ;;  %v1484_v58 = vld [vmem:[%s1878_s3 + $0x1b4] ss:$12 sps:$4 sm:$0xff]   ;;  %v1482_v60 = vld [vmem:[%s1878_s3 + $0x1b0] ss:$12 sps:$4 sm:$0xff]   ;;  %v1487_v61 = vld [vmem:[%s1878_s3 + $0x1cc] ss:$12 sps:$4 sm:$0xff]  }
  0x1a   : > { %v1517_v59 = vld [vmem:[%s1878_s3 + $0x1a0] ss:$12 sps:$4 sm:$0xff]   ;;  %v1518_v62 = vld [vmem:[%s1878_s3 + $0x1b8] ss:$12 sps:$4 sm:$0xff]   ;;  %v1485_v63 = vld [vmem:[%s1878_s3 + $0x1c8] ss:$12 sps:$4 sm:$0xff]  }
  0x1b   : > { %v1490_v0 = vld [vmem:[%s1878_s3 + $0x1e4] ss:$12 sps:$4 sm:$0xff]   ;;  %v1488_v2 = vld [vmem:[%s1878_s3 + $0x1e0] ss:$12 sps:$4 sm:$0xff]   ;;  %v1493_v3 = vld [vmem:[%s1878_s3 + $0x1fc] ss:$12 sps:$4 sm:$0xff]  }
  0x1c   : > { %829 = vmatpush1.bf16.msra.mxu0 %v1442_v11  ;;  %1331 = vmatpush3.bf16.msra.mxu1 %v1507_v34  ;;  %v1519_v1 = vld [vmem:[%s1878_s3 + $0x1d0] ss:$12 sps:$4 sm:$0xff]   ;;  %v1520_v4 = vld [vmem:[%s1878_s3 + $0x1e8] ss:$12 sps:$4 sm:$0xff]   ;;  %v1491_v5 = vld [vmem:[%s1878_s3 + $0x1f8] ss:$12 sps:$4 sm:$0xff]  }
  0x1d   : > { %830 = vmatprep.subr.bf16.mxu0 %v1443_v12  ;;  %1332 = vmatprep.subr.bf16.mxu1 %v1508_v35  ;;  %v1496_v6 = vld [vmem:[%s1878_s3 + $0x214] ss:$12 sps:$4 sm:$0xff]   ;;  %v1494_v8 = vld [vmem:[%s1878_s3 + $0x210] ss:$12 sps:$4 sm:$0xff]   ;;  %v1499_v9 = vld [vmem:[%s1878_s3 + $0x22c] ss:$12 sps:$4 sm:$0xff]  }
  0x1e   : > { %v1521_v7 = vld [vmem:[%s1878_s3 + $0x200] ss:$12 sps:$4 sm:$0xff]   ;;  %v1522_v10 = vld [vmem:[%s1878_s3 + $0x218] ss:$12 sps:$4 sm:$0xff]   ;;  %v1497_v11 = vld [vmem:[%s1878_s3 + $0x228] ss:$12 sps:$4 sm:$0xff]  }
  0x1f   : > { %v1523_v12 = vld [vmem:[%s1878_s3 + $0x230] ss:$12 sps:$4 sm:$0xff]   ;;  %v1475_v13 = vld [vmem:[%s1642_s26 + $0x8] ss:$0 sps:$4 sm:$0xff]   ;;  %s1240_s11 = sshll.u32 %s1886_s18, 2  ;;  %vm996_vm1 = vcmask 1043456  }
  0x20   : > { %831 = vmatpush1.bf16.msra.mxu0 %v1445_v15  ;;  %1333 = vmatpush3.bf16.msra.mxu1 %v1509_v38  ;;  %s286_s14 = scalar_lea.vmem %s1876_s1, %s1240_s11  ;;  %vm992_vm2 = vcmask 64512   ;;  %s293_s22 = scalar_lea.vmem %s1877_s2, %s1240_s11 }
  0x21   : > { %832 = vmatprep.subr.bf16.mxu0 %v1446_v16  ;;  %1334 = vmatprep.subr.bf16.mxu1 %v1510_v39 }
  0x24   : > { %833 = vmatpush1.bf16.msra.mxu0 %v1448_v17  ;;  %1335 = vmatpush3.bf16.msra.mxu1 %v1511_v42 }
  0x25   : > { %834 = vmatprep.subr.bf16.mxu0 %v1449_v18  ;;  %1336 = vmatprep.subr.bf16.mxu1 %v1512_v43 }
  0x28   : > { %835 = vmatpush1.bf16.msra.mxu0 %v1451_v19  ;;  %1337 = vmatpush3.bf16.msra.mxu1 %v1513_v46  ;;  %v408_v19 = vlaneseq }
  0x29   : > { %836 = vmatprep.subr.bf16.mxu0 %v1452_v20  ;;  %1338 = vmatprep.subr.bf16.mxu1 %v1514_v47  ;;  %v1040_v47 = vld [vmem:[%s293_s22] sm:$0xf] }
  0x2a   : > { %v409_v20 = vshrl.u32 %v408_v19, 7 }
  0x2c   : > { %837 = vmatpush1.bf16.msra.mxu0 %v1454_v21  ;;  %1339 = vmatpush3.bf16.msra.mxu1 %v1515_v50  ;;  %v418_v21 = vsub.s32 2, %v409_v20  ;;  %v410_v22 = vsub.s32 0, %v409_v20  ;;  %v414_v24 = vsub.s32 1, %v409_v20 }
  0x2d   : > { %838 = vmatprep.subr.bf16.mxu0 %v1455_v23  ;;  %1359 = vmatprep.subr.bf16.mxu1 %v1550_v54  ;;  %v406_v23 = vld [vmem:[%s1879_s4] sm:$0x7] }
  0x2e   : > { %v419_v25 = vrot.slane %v406_v23, %v418_v21  ;;  %v411_v26 = vrot.slane %v406_v23, %v410_v22  ;;  %v415_v27 = vrot.slane %v406_v23, %v414_v24 }
  0x2f   : > { %933 = vmatmul.mubr.bf16.vlgmr.msra.gmra.mrb[0].mxu1 %v1243_v51 }
  0x30   : > { %839 = vmatpush1.bf16.msra.mxu0 %v1457_v28  ;;  %1360 = vmatpush3.bf16.msra.mxu1 %v1516_v55 }
  0x31   : > { %840 = vmatprep.subr.bf16.mxu0 %v1458_v29  ;;  %1375 = vmatprep.mubr.msk.bf16.mxu1 %vm1552_vm0, %v1550_v54 }
  0x32   : > { %1361 = vmatprep.subr.bf16.mxu1 %v1550_v54 }
  0x34   : > { %841 = vmatpush1.bf16.msra.mxu0 %v1460_v32  ;;  %1362 = vmatpush3.bf16.msra.mxu1 %v1517_v59 }
  0x35   : > { %842 = vmatprep.subr.bf16.mxu0 %v1461_v33  ;;  %1363 = vmatprep.subr.bf16.mxu1 %v1550_v54 }
  0x38   : > { %843 = vmatpush1.bf16.msra.mxu0 %v1463_v36  ;;  %1364 = vmatpush3.bf16.msra.mxu1 %v1518_v62 }
  0x39   : > { %844 = vmatprep.subr.bf16.mxu0 %v1464_v37  ;;  %1365 = vmatprep.subr.bf16.mxu1 %v1550_v54 }
  0x3c   : > { %845 = vmatpush1.bf16.msra.mxu0 %v1466_v40  ;;  %1366 = vmatpush3.bf16.msra.mxu1 %v1519_v1 }
  0x3d   : > { %846 = vmatprep.subr.bf16.mxu0 %v1467_v41  ;;  %1367 = vmatprep.subr.bf16.mxu1 %v1550_v54 }
  0x40   : > { %847 = vmatpush1.bf16.msra.mxu0 %v1469_v44  ;;  %1368 = vmatpush3.bf16.msra.mxu1 %v1520_v4  ;;  %v990_v44 = vld [vmem:[%s286_s14] sm:$0xf] }
  0x41   : > { %848 = vmatprep.subr.bf16.mxu0 %v1470_v45  ;;  %1369 = vmatprep.subr.bf16.mxu1 %v1550_v54 }
  0x44   : > { %849 = vmatpush1.bf16.msra.mxu0 %v1472_v48  ;;  %1370 = vmatpush3.bf16.msra.mxu1 %v1521_v7 }
  0x45   : > { %859 = vmatprep.subr.bf16.mxu0 %v1478_v49  ;;  %1371 = vmatprep.subr.bf16.mxu1 %v1550_v54 }
  0x47   : > { %851 = vmatmul.mubr.bf16.vlgmr.msra.gmra.mrb[0].mxu0 %v1243_v51 }
  0x48   : > { %860 = vmatpush1.bf16.msra.mxu0 %v1476_v52  ;;  %891 = vmatprep.mubr.bf16.mxu0 %v1551_v57 }
  0x49   : > { %861 = vmatprep.subr.bf16.mxu0 %v1481_v53  ;;  %1372 = vmatpush3.bf16.msra.mxu1 %v1522_v10 }
  0x4a   : > { %1373 = vmatprep.subr.bf16.mxu1 %v1550_v54 }
  0x4c   : > { %862 = vmatpush1.bf16.msra.mxu0 %v1479_v56 }
  0x4d   : > { %863 = vmatprep.subr.bf16.mxu0 %v1484_v58  ;;  %1374 = vmatpush3.bf16.msra.mxu1 %v1523_v12 }
  0x4e   : > { %1379 = vmatprep.subr.bf16.mxu1 %v1550_v54 }
  0x50   : > { %864 = vmatpush1.bf16.msra.mxu0 %v1482_v60  ;;  %1376 = vmatmul.mubr.bf16.vlgmr.msra.gmra.mrb[4].mxu1 %v1475_v13 }
  0x51   : > { %865 = vmatprep.subr.bf16.mxu0 %v1487_v61  ;;  %1381 = vmatprep.mubr.msk.bf16.mxu1 %vm1552_vm0, %v1550_v54 }
  0x54   : > { %866 = vmatpush1.bf16.msra.mxu0 %v1485_v63 }
  0x55   : > { %867 = vmatprep.subr.bf16.mxu0 %v1490_v0 }
  0x58   : > { %868 = vmatpush1.bf16.msra.mxu0 %v1488_v2 }
  0x59   : > { %869 = vmatprep.subr.bf16.mxu0 %v1493_v3 }
  0x5c   : > { %870 = vmatpush1.bf16.msra.mxu0 %v1491_v5 }
  0x5d   : > { %871 = vmatprep.subr.bf16.mxu0 %v1496_v6 }
  0x60   : > { %872 = vmatpush1.bf16.msra.mxu0 %v1494_v8 }
  0x61   : > { %873 = vmatprep.subr.bf16.mxu0 %v1499_v9 }
  0x64   : > { %874 = vmatpush1.bf16.msra.mxu0 %v1497_v11 }
  0x67   : > { %892 = vmatmul.mubr.bf16.vlgmr.msra.gmra.mrb[0].mxu0 %v1475_v13 }
 0x102   : > { %v1340_v14 = vpop.f32.mrb[0].mxu1 }
 0x103   : > { %v1341_v15 = vpop.f32.mrb[1].mxu1 }
 0x104   : > { %v1342_v16 = vadd.f32 %v1341_v15, %v1340_v14  ;;  %v1343_v17 = vpop.f32.mrb[2].mxu1 }
 0x105   : > { %v1344_v18 = vpop.f32.mrb[3].mxu1 }
 0x106   : > { %v935_v28 = vadd.f32 %v1342_v16, %v419_v25 }
 0x123   : > { %v974_v34 = vpop.f32.mrb[4].mxu1 }
 0x124   : > { %v975_v36 = vadd.f32 %v974_v34, %v935_v28  ;;  %v1377_v37 = vpop.f32.mrb[5].mxu1 }
 0x125   : > { %v977_v39 = vpop.f32.mrb[6].mxu1 }
 0x126   : > { %v1098_v40 = vmul.f32 %v975_v36, %v975_v36  ;;  %v1378_v41 = vpop.f32.mrb[7].mxu1 }
 0x128   : > { %1099 = vadd.xlane.f32.xlu1 %v1098_v40 }
 0x13a   : > { %v893_v29 = vpop.f32.mrb[0].mxu0 }
 0x13b   : > { %v1391_v30 = vadd.f32 %v893_v29, %v411_v26  ;;  %v895_v31 = vpop.f32.mrb[1].mxu0 }
 0x13c   : > { %v1392_v32 = vadd.f32 %v895_v31, %v415_v27  ;;  %v897_v33 = vpop.f32.mrb[2].mxu0 }
 0x13d   : > { %v898_v35 = vpop.f32.mrb[3].mxu0 }
 0x13e   : > { %v1323_v38 = vpack.c.bf16 %v1392_v32, %v1391_v30 }
 0x140   : > { %988 = vst [vmem:[#allocation2] sm:$0xff] %v1323_v38 }
 0x147   : > { %v991_v42 = vld [vmem:[#allocation2] sm:$0xf]  ;;  %v1041_v45 = vld [vmem:[#allocation2 + $0x4] sm:$0xf] }
 0x148   : > { %v998_v43 = vsel %vm996_vm1, %v991_v42, 0  ;;  %v1046_v46 = vsel %vm996_vm1, %v1041_v45, 0 }
 0x149   : > { %1380 = vmatpush3.bf16.msra.mxu1 %v998_v43 }
 0x14a   : > { %1385 = vmatprep.subr.bf16.mxu1 %v1550_v54 }
 0x14c   : > { %1382 = vmatmul.mubr.msk.bf16.vlgmr.msra.gmra.mrb[8].mxu1 %vm992_vm2, %v990_v44 }
 0x14d   : > { %1386 = vmatpush3.bf16.msra.mxu1 %v1046_v46  ;;  %1387 = vmatprep.mubr.msk.bf16.mxu1 %vm1552_vm0, %v1550_v54 }
 0x154   : > { %1388 = vmatmul.mubr.msk.bf16.vlgmr.msra.gmra.mrb[12].mxu1 %vm992_vm2, %v1040_v47 }
 0x1b5   : > { %v1100_v61 = vpop.xlane.xlu1 %1099 }
 0x21f   : > { %v1034_v48 = vpop.f32.mrb[8].mxu1 }
 0x220   : > { %v1383_v49 = vpop.f32.mrb[9].mxu1  ;;  %v1091_v50 = vmul.f32 %v1034_v48, %v1034_v48 }
 0x221   : > { %v1037_v51 = vpop.f32.mrb[10].mxu1 }
 0x222   : > { %v1384_v52 = vpop.f32.mrb[11].mxu1  ;;  %1092 = vadd.xlane.f32.xlu0 %v1091_v50 }
 0x227   : > { %v1082_v53 = vpop.f32.mrb[12].mxu1 }
 0x228   : > { %v1094_v55 = vmul.f32 %v1082_v53, %v1082_v53  ;;  %v1389_v56 = vpop.f32.mrb[13].mxu1 }
 0x229   : > { %v1085_v57 = vpop.f32.mrb[14].mxu1 }
 0x22a   : > { %1095 = vadd.xlane.f32.xlu0 %v1094_v55  ;;  %v1390_v58 = vpop.f32.mrb[15].mxu1 }
 0x2af   : > { %v1093_v59 = vpop.xlane.xlu0 %1092 }
 0x2b7   : > { %v1096_v54 = vpop.xlane.xlu0 %1095 }
 0x2b8   : > { %v1097_v60 = vadd.f32 %v1096_v54, %v1093_v59 }
 0x2ba   : > { %v1101_v62 = vadd.f32 %v1100_v61, %v1097_v60 }
 0x2bc   : > { %v1102_v63 = vmax.f32 %v1101_v62, 1e-24 }
 0x2be   : > { %1524 = vrsqrt.f32 %v1102_v63 }
 0x2c8   : > { %v1525_v0 = vpop.eup %1524 }
 0x2c9   : > { %v1104_v1 = vmul.f32 %v1525_v0, %v1034_v48  ;;  %v1109_v2 = vmul.f32 %v1525_v0, %v1082_v53  ;;  %v1114_v3 = vmul.f32 %v1525_v0, %v975_v36 }
 0x2cb   : > { %v1105_v4 = vmul.f32 0.1, %v1104_v1  ;;  %v1110_v5 = vmul.f32 0.1, %v1109_v2  ;;  %v1115_v6 = vmul.f32 0.1, %v1114_v3 }
 0x2cd   : > { %v1106_v7 = vmax.f32 %v1104_v1, %v1105_v4  ;;  %v1111_v8 = vmax.f32 %v1109_v2, %v1110_v5  ;;  %v1116_v9 = vmax.f32 %v1114_v3, %v1115_v6 }
 0x2cf   : > { %v1107_v10 = vpack.c.bf16 %v1106_v7, %v1106_v7  ;;  %v1112_v11 = vpack.c.bf16 %v1111_v8, %v1111_v8  ;;  %v1117_v12 = vpack.c.bf16 %v1116_v9, %v1116_v9 }
 0x2d1   : > { %1108 = vst [vmem:[%s302_s25] sm:$0xf] %v1107_v10  ;;  %1113 = vst [vmem:[%s302_s25 + $0x4] sm:$0xf] %v1112_v11 }
 0x2d2   : > { %1118 = vst [vmem:[%s302_s25 + $0x8] sm:$0xf] %v1117_v12 }
 0x2d3 PF: > { %s15_s20 = sadd.s32 1, %s1548_s20   ;;  %s1881_s18 = smov %s1544_s19 }
 0x2d4   : > { %p12_p5 = scmp.ge.s32.totalorder %s15_s20, 4   ;;  %s1882_s19 = smov %s1884_s21 }
 0x2d6   :  { %14 = sbr.rel (!%p12_p5) target bundleno = 2 (0x2), region = 81 }

</bundles_post_ra>
